<compile_context>
chip_gen: v7x
topology: tpu7x:2x2x1
jax: 0.10.0
libtpu: 0.0.40
codegen_flags: <defaults>
</compile_context>

<pallas_src>
import jax
import jax.numpy as jnp
from jax.experimental import pallas as pl
from jax.experimental.pallas import tpu as pltpu


LANE = 128  # pad node / feature widths up to multiples of the 128-lane vreg


# ----------------------------- Pallas kernel --------------------------------

def _gcn_fused_kernel(a_ref, x_ref,
                      w1_ref, b1_ref, w2_ref, b2_ref, w3_ref, b3_ref,
                      wl_ref, bl_ref, o_ref,
                      h1_ref, h2_ref, xw_ref):
    """Fused 3-layer GCN + linear head.

    grid = (3 stages, N_pad // tm row tiles).  Per stage, tile 0 computes the
    dense feature transform XW = H_prev @ W for the whole graph into VMEM
    scratch; every row tile then does A_hat[rows, :] @ XW on the MXU.
    """
    s = pl.program_id(0)          # stage: 0,1 = conv1/conv2 (+relu), 2 = conv3 + head
    i = pl.program_id(1)          # node row tile
    tm = a_ref.shape[0]
    row = pl.multiple_of(i * tm, tm)

    # ---- Stage prologue (first row tile only): dense F->H transform for the
    #      whole graph, reused by every row tile of this stage.
    @pl.when((i == 0) & (s == 0))
    def _():
        xw_ref[...] = jnp.dot(x_ref[...], w1_ref[...],
                              preferred_element_type=jnp.float32
                              ).astype(jnp.bfloat16)

    @pl.when((i == 0) & (s == 1))
    def _():
        xw_ref[...] = jnp.dot(h1_ref[...], w2_ref[...],
                              preferred_element_type=jnp.float32
                              ).astype(jnp.bfloat16)

    @pl.when((i == 0) & (s == 2))
    def _():
        xw_ref[...] = jnp.dot(h2_ref[...], w3_ref[...],
                              preferred_element_type=jnp.float32
                              ).astype(jnp.bfloat16)

    # ---- Row-tile aggregation: A_hat[rows, :] @ XW  (MXU, f32 accumulation).
    agg = jnp.dot(a_ref[...], xw_ref[...], preferred_element_type=jnp.float32)

    @pl.when(s == 0)
    def _():
        h = jnp.maximum(agg + b1_ref[...], 0.0)
        h1_ref[pl.ds(row, tm), :] = h.astype(jnp.bfloat16)

    @pl.when(s == 1)
    def _():
        h = jnp.maximum(agg + b2_ref[...], 0.0)
        h2_ref[pl.ds(row, tm), :] = h.astype(jnp.bfloat16)

    @pl.when(s == 2)
    def _():
        # conv3 has no relu; F.dropout(p=0.5) is identity in eval mode.
        # TODO(synk): training-mode dropout (pltpu.prng_*) is not implemented.
        h3 = agg + b3_ref[...]
        out = jnp.dot(h3.astype(jnp.bfloat16), wl_ref[...],
                      preferred_element_type=jnp.float32)
        o_ref[...] = out + bl_ref[...]

    @pl.when(s < 2)
    def _():
        # Keep writebacks of not-yet-final visits deterministic; the s == 2
        # visit of the same row tile overwrites them later in grid order.
        o_ref[...] = jnp.zeros_like(o_ref)


def _vmem_limit_bytes():
    """Generation-aware scoped-VMEM limit (~75% of physical, <= 100 MiB)."""
    try:
        cap = int(pltpu.get_tpu_info().vmem_capacity_bytes)
    except Exception:
        cap = 64 * 1024 * 1024   # be conservative (v7x-sized) if query fails
    return int(min(cap * 3 // 4, 100 * 1024 * 1024))


def gcn_fused(a_hat, x, w1, b1, w2, b2, w3, b3, wl, bl, *, tm):
    n_pad = a_hat.shape[0]
    fp = x.shape[1]
    hp = w1.shape[1]
    cp = wl.shape[1]
    assert n_pad % tm == 0
    n_tiles = n_pad // tm

    # Whole-array, single-copy VMEM residency (no pointless double-buffering)
    # for operands that every grid step needs in full.
    resident = pl.BlockSpec(memory_space=pltpu.MemorySpace.VMEM)

    flops = (2 * n_pad * fp * hp + 2 * n_pad * n_pad * hp            # layer 1
             + 2 * (2 * n_pad * hp * hp + 2 * n_pad * n_pad * hp)    # layers 2,3
             + 2 * n_pad * hp * cp)                                  # linear head
    bytes_accessed = (3 * n_pad * n_pad * 2          # A_hat, re-read once per stage
                      + n_pad * fp * 2 + n_pad * cp * 4
                      + 2 * (fp * hp + 2 * hp * hp + hp * cp)
                      + 4 * (3 * hp + cp))

    return pl.pallas_call(
        _gcn_fused_kernel,
        out_shape=jax.ShapeDtypeStruct((n_pad, cp), jnp.float32),
        grid=(3, n_tiles),
        in_specs=[
            pl.BlockSpec((tm, n_pad), lambda s, i: (i, 0)),  # A_hat row tiles (pipelined)
            resident,                                        # X
            resident, resident,                              # W1, b1
            resident, resident,                              # W2, b2
            resident, resident,                              # W3, b3
            resident, resident,                              # W_lin, b_lin
        ],
        out_specs=pl.BlockSpec((tm, cp), lambda s, i: (i, 0)),
        scratch_shapes=[
            pltpu.VMEM((n_pad, hp), jnp.bfloat16),   # H after layer 1
            pltpu.VMEM((n_pad, hp), jnp.bfloat16),   # H after layer 2
            pltpu.VMEM((n_pad, hp), jnp.bfloat16),   # XW of the current stage
        ],
        compiler_params=pltpu.CompilerParams(
            # Stage axis is a hard sequential dependency; the row-tile axis is
            # also kept "arbitrary" because stage s+1 reads the full H scratch
            # written by every row tile of stage s (per-core scratch).
            dimension_semantics=("arbitrary", "arbitrary"),
            vmem_limit_bytes=_vmem_limit_bytes(),
        ),
        cost_estimate=pl.CostEstimate(flops=flops, transcendentals=0,
                                      bytes_accessed=bytes_accessed),
    )(a_hat, x, w1, b1, w2, b2, w3, b3, wl, bl)


# ------------------------------ JAX glue ------------------------------------

def build_norm_adj(edge_index, num_nodes):
    """Dense D^-1/2 (A + I) D^-1/2, matching PyG GCNConv's gcn_norm."""
    src = edge_index[0]
    dst = edge_index[1]
    loop = jnp.arange(num_nodes, dtype=edge_index.dtype)
    src = jnp.concatenate([src, loop])
    dst = jnp.concatenate([dst, loop])
    deg = jnp.zeros((num_nodes,), jnp.float32).at[dst].add(1.0)
    dinv = jnp.where(deg > 0, 1.0 / jnp.sqrt(deg), 0.0)
    vals = dinv[src] * dinv[dst]
    a_hat = jnp.zeros((num_nodes, num_nodes), jnp.float32).at[dst, src].add(vals)
    return a_hat


def init_params(key, in_channels=128, hidden_channels=32, out_channels=40):
    """Deterministic glorot-style init (shapes match the PyTorch module)."""
    keys = jax.random.split(key, 4)

    def glorot(k, fan_in, fan_out):
        limit = jnp.sqrt(6.0 / (fan_in + fan_out))
        return jax.random.uniform(k, (fan_in, fan_out), jnp.float32, -limit, limit)

    return {
        "conv1_w": glorot(keys[0], in_channels, hidden_channels),
        "conv1_b": jnp.zeros((1, hidden_channels), jnp.float32),
        "conv2_w": glorot(keys[1], hidden_channels, hidden_channels),
        "conv2_b": jnp.zeros((1, hidden_channels), jnp.float32),
        "conv3_w": glorot(keys[2], hidden_channels, hidden_channels),
        "conv3_b": jnp.zeros((1, hidden_channels), jnp.float32),
        "lin_w": glorot(keys[3], hidden_channels, out_channels),
        "lin_b": jnp.zeros((1, out_channels), jnp.float32),
    }


def _round_up(v, m):
    return ((v + m - 1) // m) * m


def _pad_to(a, rows, cols):
    return jnp.pad(a, ((0, rows - a.shape[0]), (0, cols - a.shape[1])))


def _pick_row_tile(n_pad, max_bytes=8 * 1024 * 1024):
    """Largest 128-multiple row tile dividing N_pad whose double-buffered
    A_hat block stays under max_bytes."""
    tm = 128
    for cand in (256, 384, 512):
        if n_pad % cand == 0 and 2 * cand * n_pad * 2 <= max_bytes:
            tm = cand
    return tm


def gcn_forward(params, x, edge_index):
    n, f = x.shape
    hidden = params["conv1_w"].shape[1]
    out_channels = params["lin_b"].shape[1]

    n_pad = _round_up(n, LANE)
    fp = _round_up(f, LANE)
    hp = _round_up(hidden, LANE)
    cp = _round_up(out_channels, LANE)

    # Graph normalization (scatter-add glue) stays in plain JAX.
    a_hat = _pad_to(build_norm_adj(edge_index, n), n_pad, n_pad).astype(jnp.bfloat16)
    x_bf = _pad_to(x, n_pad, fp).astype(jnp.bfloat16)

    # Zero-pad feature widths to 128 lanes; zero pads are semantically exact.
    w1 = _pad_to(params["conv1_w"], fp, hp).astype(jnp.bfloat16)
    b1 = _pad_to(params["conv1_b"], 1, hp)
    w2 = _pad_to(params["conv2_w"], hp, hp).astype(jnp.bfloat16)
    b2 = _pad_to(params["conv2_b"], 1, hp)
    w3 = _pad_to(params["conv3_w"], hp, hp).astype(jnp.bfloat16)
    b3 = _pad_to(params["conv3_b"], 1, hp)
    wl = _pad_to(params["lin_w"], hp, cp).astype(jnp.bfloat16)
    bl = _pad_to(params["lin_b"], 1, cp)

    tm = _pick_row_tile(n_pad)
    out_padded = gcn_fused(a_hat, x_bf, w1, b1, w2, b2, w3, b3, wl, bl, tm=tm)
    # Padded rows contain relu(bias)/bias garbage; padded cols are junk too —
    # slice both away.
    return out_padded[:n, :out_channels]


# ------------------------------- main ---------------------------------------

if __name__ == "__main__":
    key = jax.random.PRNGKey(0)
    k_x, k_e, k_p = jax.random.split(key, 3)

    num_nodes = 64
    num_edges = 256
    in_channels = 128
    hidden_channels = 32
    out_channels = 40

    x = jax.random.normal(k_x, (num_nodes, in_channels), jnp.float32)
    edge_index = jax.random.randint(k_e, (2, num_edges), 0, num_nodes, jnp.int32)

    params = init_params(k_p, in_channels, hidden_channels, out_channels)

    out = gcn_forward(params, x, edge_index)
    out = jax.block_until_ready(out)
    assert out.shape == (num_nodes, out_channels), out.shape
    assert out.dtype == jnp.float32
    print("KERNEL_OK")
</pallas_src>

<mosaic_0001>
module attributes {stable_mosaic.version = 11 : i64} {
  func.func @_gcn_fused_kernel(%arg0: i32, %arg1: i32, %arg2: memref<128x128xbf16, #tpu.memory_space<vmem>>, %arg3: memref<128x128xbf16, #tpu.memory_space<vmem>>, %arg4: memref<128x128xbf16, #tpu.memory_space<vmem>>, %arg5: memref<1x128xf32, #tpu.memory_space<vmem>>, %arg6: memref<128x128xbf16, #tpu.memory_space<vmem>>, %arg7: memref<1x128xf32, #tpu.memory_space<vmem>>, %arg8: memref<128x128xbf16, #tpu.memory_space<vmem>>, %arg9: memref<1x128xf32, #tpu.memory_space<vmem>>, %arg10: memref<128x128xbf16, #tpu.memory_space<vmem>>, %arg11: memref<1x128xf32, #tpu.memory_space<vmem>>, %arg12: memref<128x128xf32, #tpu.memory_space<vmem>>, %arg13: memref<128x128xbf16, #tpu.memory_space<vmem>>, %arg14: memref<128x128xbf16, #tpu.memory_space<vmem>>, %arg15: memref<128x128xbf16, #tpu.memory_space<vmem>>) attributes {dimension_semantics = [#tpu.dimension_semantics<arbitrary>, #tpu.dimension_semantics<arbitrary>], iteration_bounds = array<i64: 3, 1>, scalar_prefetch = 0 : i64, scratch_operands = 3 : i64, tpu.core_type = #tpu.core_type<tc>, window_params = [{transform_indices = @transform_0, window_bounds = array<i64: 128, 128>}, {pipeline_mode = #tpu.pipeline_mode<synchronous>, transform_indices = @transform_1, window_bounds = array<i64: 128, 128>}, {pipeline_mode = #tpu.pipeline_mode<synchronous>, transform_indices = @transform_2, window_bounds = array<i64: 128, 128>}, {pipeline_mode = #tpu.pipeline_mode<synchronous>, transform_indices = @transform_3, window_bounds = array<i64: 1, 128>}, {pipeline_mode = #tpu.pipeline_mode<synchronous>, transform_indices = @transform_4, window_bounds = array<i64: 128, 128>}, {pipeline_mode = #tpu.pipeline_mode<synchronous>, transform_indices = @transform_5, window_bounds = array<i64: 1, 128>}, {pipeline_mode = #tpu.pipeline_mode<synchronous>, transform_indices = @transform_6, window_bounds = array<i64: 128, 128>}, {pipeline_mode = #tpu.pipeline_mode<synchronous>, transform_indices = @transform_7, window_bounds = array<i64: 1, 128>}, {pipeline_mode = #tpu.pipeline_mode<synchronous>, transform_indices = @transform_8, window_bounds = array<i64: 128, 128>}, {pipeline_mode = #tpu.pipeline_mode<synchronous>, transform_indices = @transform_9, window_bounds = array<i64: 1, 128>}, {transform_indices = @transform_10, window_bounds = array<i64: 128, 128>}]} {
    %c128_i32 = arith.constant 128 : i32
    %0 = arith.muli %arg1, %c128_i32 : i32
    %1 = tpu.assume_multiple %0, 128 : i32
    %c0_i32 = arith.constant 0 : i32
    %2 = arith.cmpi eq, %arg1, %c0_i32 : i32
    %c0_i32_0 = arith.constant 0 : i32
    %3 = arith.cmpi eq, %arg0, %c0_i32_0 : i32
    %4 = arith.andi %2, %3 : i1
    %5 = arith.extui %4 : i1 to i32
    %c0_i32_1 = arith.constant 0 : i32
    %6 = arith.cmpi ne, %5, %c0_i32_1 : i32
    scf.if %6 {
      %c0_17 = arith.constant 0 : index
      %c0_18 = arith.constant 0 : index
      %32 = vector.load %arg3[%c0_17, %c0_18] : memref<128x128xbf16, #tpu.memory_space<vmem>>, vector<128x128xbf16>
      %c0_19 = arith.constant 0 : index
      %c0_20 = arith.constant 0 : index
      %33 = vector.load %arg4[%c0_19, %c0_20] : memref<128x128xbf16, #tpu.memory_space<vmem>>, vector<128x128xbf16>
      %cst_21 = arith.constant dense<0.000000e+00> : vector<128x128xf32>
      %34 = tpu.matmul %32, %33, %cst_21 {dimension_numbers = #tpu.dot_dimension_numbers<[1], [0], [0], [1], [0, 0, 1, 1], [], []>} : vector<128x128xbf16>, vector<128x128xbf16>, vector<128x128xf32> -> vector<128x128xf32>
      %35 = arith.truncf %34 : vector<128x128xf32> to vector<128x128xbf16>
      %c0_22 = arith.constant 0 : index
      %c0_23 = arith.constant 0 : index
      %36 = vector.load %arg15[%c0_22, %c0_23] : memref<128x128xbf16, #tpu.memory_space<vmem>>, vector<128x128xbf16>
      tpu.vector_store %arg15[%c0_22, %c0_23], %35 {strides = array<i32>} : memref<128x128xbf16, #tpu.memory_space<vmem>>, vector<128x128xbf16>,
    } else {
    }
    %c0_i32_2 = arith.constant 0 : i32
    %7 = arith.cmpi eq, %arg1, %c0_i32_2 : i32
    %c1_i32 = arith.constant 1 : i32
    %8 = arith.cmpi eq, %arg0, %c1_i32 : i32
    %9 = arith.andi %7, %8 : i1
    %10 = arith.extui %9 : i1 to i32
    %c0_i32_3 = arith.constant 0 : i32
    %11 = arith.cmpi ne, %10, %c0_i32_3 : i32
    scf.if %11 {
      %c0_17 = arith.constant 0 : index
      %c0_18 = arith.constant 0 : index
      %32 = vector.load %arg13[%c0_17, %c0_18] : memref<128x128xbf16, #tpu.memory_space<vmem>>, vector<128x128xbf16>
      %c0_19 = arith.constant 0 : index
      %c0_20 = arith.constant 0 : index
      %33 = vector.load %arg6[%c0_19, %c0_20] : memref<128x128xbf16, #tpu.memory_space<vmem>>, vector<128x128xbf16>
      %cst_21 = arith.constant dense<0.000000e+00> : vector<128x128xf32>
      %34 = tpu.matmul %32, %33, %cst_21 {dimension_numbers = #tpu.dot_dimension_numbers<[1], [0], [0], [1], [0, 0, 1, 1], [], []>} : vector<128x128xbf16>, vector<128x128xbf16>, vector<128x128xf32> -> vector<128x128xf32>
      %35 = arith.truncf %34 : vector<128x128xf32> to vector<128x128xbf16>
      %c0_22 = arith.constant 0 : index
      %c0_23 = arith.constant 0 : index
      %36 = vector.load %arg15[%c0_22, %c0_23] : memref<128x128xbf16, #tpu.memory_space<vmem>>, vector<128x128xbf16>
      tpu.vector_store %arg15[%c0_22, %c0_23], %35 {strides = array<i32>} : memref<128x128xbf16, #tpu.memory_space<vmem>>, vector<128x128xbf16>,
    } else {
    }
    %c0_i32_4 = arith.constant 0 : i32
    %12 = arith.cmpi eq, %arg1, %c0_i32_4 : i32
    %c2_i32 = arith.constant 2 : i32
    %13 = arith.cmpi eq, %arg0, %c2_i32 : i32
    %14 = arith.andi %12, %13 : i1
    %15 = arith.extui %14 : i1 to i32
    %c0_i32_5 = arith.constant 0 : i32
    %16 = arith.cmpi ne, %15, %c0_i32_5 : i32
    scf.if %16 {
      %c0_17 = arith.constant 0 : index
      %c0_18 = arith.constant 0 : index
      %32 = vector.load %arg14[%c0_17, %c0_18] : memref<128x128xbf16, #tpu.memory_space<vmem>>, vector<128x128xbf16>
      %c0_19 = arith.constant 0 : index
      %c0_20 = arith.constant 0 : index
      %33 = vector.load %arg8[%c0_19, %c0_20] : memref<128x128xbf16, #tpu.memory_space<vmem>>, vector<128x128xbf16>
      %cst_21 = arith.constant dense<0.000000e+00> : vector<128x128xf32>
      %34 = tpu.matmul %32, %33, %cst_21 {dimension_numbers = #tpu.dot_dimension_numbers<[1], [0], [0], [1], [0, 0, 1, 1], [], []>} : vector<128x128xbf16>, vector<128x128xbf16>, vector<128x128xf32> -> vector<128x128xf32>
      %35 = arith.truncf %34 : vector<128x128xf32> to vector<128x128xbf16>
      %c0_22 = arith.constant 0 : index
      %c0_23 = arith.constant 0 : index
      %36 = vector.load %arg15[%c0_22, %c0_23] : memref<128x128xbf16, #tpu.memory_space<vmem>>, vector<128x128xbf16>
      tpu.vector_store %arg15[%c0_22, %c0_23], %35 {strides = array<i32>} : memref<128x128xbf16, #tpu.memory_space<vmem>>, vector<128x128xbf16>,
    } else {
    }
    %c0 = arith.constant 0 : index
    %c0_6 = arith.constant 0 : index
    %17 = vector.load %arg2[%c0, %c0_6] : memref<128x128xbf16, #tpu.memory_space<vmem>>, vector<128x128xbf16>
    %c0_7 = arith.constant 0 : index
    %c0_8 = arith.constant 0 : index
    %18 = vector.load %arg15[%c0_7, %c0_8] : memref<128x128xbf16, #tpu.memory_space<vmem>>, vector<128x128xbf16>
    %cst = arith.constant dense<0.000000e+00> : vector<128x128xf32>
    %19 = tpu.matmul %17, %18, %cst {dimension_numbers = #tpu.dot_dimension_numbers<[1], [0], [0], [1], [0, 0, 1, 1], [], []>} : vector<128x128xbf16>, vector<128x128xbf16>, vector<128x128xf32> -> vector<128x128xf32>
    %c0_i32_9 = arith.constant 0 : i32
    %20 = arith.cmpi eq, %arg0, %c0_i32_9 : i32
    %21 = arith.extui %20 : i1 to i32
    %c0_i32_10 = arith.constant 0 : i32
    %22 = arith.cmpi ne, %21, %c0_i32_10 : i32
    scf.if %22 {
      %c0_17 = arith.constant 0 : index
      %c0_18 = arith.constant 0 : index
      %32 = vector.load %arg5[%c0_17, %c0_18] : memref<1x128xf32, #tpu.memory_space<vmem>>, vector<1x128xf32>
      %33 = vector.broadcast %32 : vector<1x128xf32> to vector<128x128xf32>
      %34 = arith.addf %19, %33 : vector<128x128xf32>
      %cst_19 = arith.constant 0.000000e+00 : f32
      %35 = vector.broadcast %cst_19 : f32 to vector<128x128xf32>
      %36 = arith.maximumf %34, %35 : vector<128x128xf32>
      %37 = arith.truncf %36 : vector<128x128xf32> to vector<128x128xbf16>
      %38 = arith.index_cast %1 : i32 to index
      %c0_20 = arith.constant 0 : index
      %39 = vector.load %arg13[%38, %c0_20] : memref<128x128xbf16, #tpu.memory_space<vmem>>, vector<128x128xbf16>
      tpu.vector_store %arg13[%38, %c0_20], %37 {strides = array<i32>} : memref<128x128xbf16, #tpu.memory_space<vmem>>, vector<128x128xbf16>,
    } else {
    }
    %c1_i32_11 = arith.constant 1 : i32
    %23 = arith.cmpi eq, %arg0, %c1_i32_11 : i32
    %24 = arith.extui %23 : i1 to i32
    %c0_i32_12 = arith.constant 0 : i32
    %25 = arith.cmpi ne, %24, %c0_i32_12 : i32
    scf.if %25 {
      %c0_17 = arith.constant 0 : index
      %c0_18 = arith.constant 0 : index
      %32 = vector.load %arg7[%c0_17, %c0_18] : memref<1x128xf32, #tpu.memory_space<vmem>>, vector<1x128xf32>
      %33 = vector.broadcast %32 : vector<1x128xf32> to vector<128x128xf32>
      %34 = arith.addf %19, %33 : vector<128x128xf32>
      %cst_19 = arith.constant 0.000000e+00 : f32
      %35 = vector.broadcast %cst_19 : f32 to vector<128x128xf32>
      %36 = arith.maximumf %34, %35 : vector<128x128xf32>
      %37 = arith.truncf %36 : vector<128x128xf32> to vector<128x128xbf16>
      %38 = arith.index_cast %1 : i32 to index
      %c0_20 = arith.constant 0 : index
      %39 = vector.load %arg14[%38, %c0_20] : memref<128x128xbf16, #tpu.memory_space<vmem>>, vector<128x128xbf16>
      tpu.vector_store %arg14[%38, %c0_20], %37 {strides = array<i32>} : memref<128x128xbf16, #tpu.memory_space<vmem>>, vector<128x128xbf16>,
    } else {
    }
    %c2_i32_13 = arith.constant 2 : i32
    %26 = arith.cmpi eq, %arg0, %c2_i32_13 : i32
    %27 = arith.extui %26 : i1 to i32
    %c0_i32_14 = arith.constant 0 : i32
    %28 = arith.cmpi ne, %27, %c0_i32_14 : i32
    scf.if %28 {
      %c0_17 = arith.constant 0 : index
      %c0_18 = arith.constant 0 : index
      %32 = vector.load %arg9[%c0_17, %c0_18] : memref<1x128xf32, #tpu.memory_space<vmem>>, vector<1x128xf32>
      %33 = vector.broadcast %32 : vector<1x128xf32> to vector<128x128xf32>
      %34 = arith.addf %19, %33 : vector<128x128xf32>
      %35 = arith.truncf %34 : vector<128x128xf32> to vector<128x128xbf16>
      %c0_19 = arith.constant 0 : index
      %c0_20 = arith.constant 0 : index
      %36 = vector.load %arg10[%c0_19, %c0_20] : memref<128x128xbf16, #tpu.memory_space<vmem>>, vector<128x128xbf16>
      %cst_21 = arith.constant dense<0.000000e+00> : vector<128x128xf32>
      %37 = tpu.matmul %35, %36, %cst_21 {dimension_numbers = #tpu.dot_dimension_numbers<[1], [0], [0], [1], [0, 0, 1, 1], [], []>} : vector<128x128xbf16>, vector<128x128xbf16>, vector<128x128xf32> -> vector<128x128xf32>
      %c0_22 = arith.constant 0 : index
      %c0_23 = arith.constant 0 : index
      %38 = vector.load %arg11[%c0_22, %c0_23] : memref<1x128xf32, #tpu.memory_space<vmem>>, vector<1x128xf32>
      %39 = vector.broadcast %38 : vector<1x128xf32> to vector<128x128xf32>
      %40 = arith.addf %37, %39 : vector<128x128xf32>
      %c0_24 = arith.constant 0 : index
      %c0_25 = arith.constant 0 : index
      %41 = vector.load %arg12[%c0_24, %c0_25] : memref<128x128xf32, #tpu.memory_space<vmem>>, vector<128x128xf32>
      tpu.vector_store %arg12[%c0_24, %c0_25], %40 {strides = array<i32>} : memref<128x128xf32, #tpu.memory_space<vmem>>, vector<128x128xf32>,
    } else {
    }
    %c2_i32_15 = arith.constant 2 : i32
    %29 = arith.cmpi slt, %arg0, %c2_i32_15 : i32
    %30 = arith.extui %29 : i1 to i32
    %c0_i32_16 = arith.constant 0 : i32
    %31 = arith.cmpi ne, %30, %c0_i32_16 : i32
    scf.if %31 {
      %cst_17 = arith.constant 0.000000e+00 : f32
      %32 = vector.broadcast %cst_17 : f32 to vector<128x128xf32>
      %c0_18 = arith.constant 0 : index
      %c0_19 = arith.constant 0 : index
      %33 = vector.load %arg12[%c0_18, %c0_19] : memref<128x128xf32, #tpu.memory_space<vmem>>, vector<128x128xf32>
      tpu.vector_store %arg12[%c0_18, %c0_19], %32 {strides = array<i32>} : memref<128x128xf32, #tpu.memory_space<vmem>>, vector<128x128xf32>,
    } else {
    }
    return
  }
  func.func @transform_0(%arg0: i32, %arg1: i32) -> (i32, i32) {
    %c0_i32 = arith.constant 0 : i32
    %c0_i32_0 = arith.constant 0 : i32
    return %arg1, %c0_i32 : i32, i32
  }
  func.func @transform_1(%arg0: i32, %arg1: i32) -> (i32, i32) {
    %c0_i32 = arith.constant 0 : i32
    %c0_i32_0 = arith.constant 0 : i32
    %c0_i32_1 = arith.constant 0 : i32
    return %c0_i32, %c0_i32_0 : i32, i32
  }
  func.func @transform_2(%arg0: i32, %arg1: i32) -> (i32, i32) {
    %c0_i32 = arith.constant 0 : i32
    %c0_i32_0 = arith.constant 0 : i32
    %c0_i32_1 = arith.constant 0 : i32
    return %c0_i32, %c0_i32_0 : i32, i32
  }
  func.func @transform_3(%arg0: i32, %arg1: i32) -> (i32, i32) {
    %c0_i32 = arith.constant 0 : i32
    %c0_i32_0 = arith.constant 0 : i32
    %c0_i32_1 = arith.constant 0 : i32
    return %c0_i32, %c0_i32_0 : i32, i32
  }
  func.func @transform_4(%arg0: i32, %arg1: i32) -> (i32, i32) {
    %c0_i32 = arith.constant 0 : i32
    %c0_i32_0 = arith.constant 0 : i32
    %c0_i32_1 = arith.constant 0 : i32
    return %c0_i32, %c0_i32_0 : i32, i32
  }
  func.func @transform_5(%arg0: i32, %arg1: i32) -> (i32, i32) {
    %c0_i32 = arith.constant 0 : i32
    %c0_i32_0 = arith.constant 0 : i32
    %c0_i32_1 = arith.constant 0 : i32
    return %c0_i32, %c0_i32_0 : i32, i32
  }
  func.func @transform_6(%arg0: i32, %arg1: i32) -> (i32, i32) {
    %c0_i32 = arith.constant 0 : i32
    %c0_i32_0 = arith.constant 0 : i32
    %c0_i32_1 = arith.constant 0 : i32
    return %c0_i32, %c0_i32_0 : i32, i32
  }
  func.func @transform_7(%arg0: i32, %arg1: i32) -> (i32, i32) {
    %c0_i32 = arith.constant 0 : i32
    %c0_i32_0 = arith.constant 0 : i32
    %c0_i32_1 = arith.constant 0 : i32
    return %c0_i32, %c0_i32_0 : i32, i32
  }
  func.func @transform_8(%arg0: i32, %arg1: i32) -> (i32, i32) {
    %c0_i32 = arith.constant 0 : i32
    %c0_i32_0 = arith.constant 0 : i32
    %c0_i32_1 = arith.constant 0 : i32
    return %c0_i32, %c0_i32_0 : i32, i32
  }
  func.func @transform_9(%arg0: i32, %arg1: i32) -> (i32, i32) {
    %c0_i32 = arith.constant 0 : i32
    %c0_i32_0 = arith.constant 0 : i32
    %c0_i32_1 = arith.constant 0 : i32
    return %c0_i32, %c0_i32_0 : i32, i32
  }
  func.func @transform_10(%arg0: i32, %arg1: i32) -> (i32, i32) {
    %c0_i32 = arith.constant 0 : i32
    %c0_i32_0 = arith.constant 0 : i32
    return %arg1, %c0_i32 : i32, i32
  }
}

</mosaic_0001>

<bundles_post_ra>
// kernel: tpu_custom_call.1
= control target key start
LH: loop header
LB: loop body
LE: loop exit
PB: predicated region body
PF: predicated region fallthrough
CT: control target
= control target key end

     0   :  { %s2911_s0 = inlined_call_operand.hbm [shape: bf16[128,128], index: 0, kind: input, shape index: {}]   ;;  %s2912_s1 = inlined_call_operand.hbm [shape: bf16[128,128], index: 1, kind: input, shape index: {}]   ;;  %s2913_s2 = inlined_call_operand.hbm [shape: bf16[128,128], index: 2, kind: input, shape index: {}]   ;;  %s2914_s3 = inlined_call_operand.vmem [shape: f32[1,128], index: 3, kind: input, shape index: {}]   ;;  %s2915_s4 = inlined_call_operand.hbm [shape: bf16[128,128], index: 4, kind: input, shape index: {}]   ;;  %s2916_s5 = inlined_call_operand.vmem [shape: f32[1,128], index: 5, kind: input, shape index: {}]   ;;  %s2917_s6 = inlined_call_operand.hbm [shape: bf16[128,128], index: 6, kind: input, shape index: {}]   ;;  %s2918_s7 = inlined_call_operand.vmem [shape: f32[1,128], index: 7, kind: input, shape index: {}]   ;;  %s2919_s8 = inlined_call_operand.hbm [shape: bf16[128,128], index: 8, kind: input, shape index: {}]   ;;  %s2920_s9 = inlined_call_operand.vmem [shape: f32[1,128], index: 9, kind: input, shape index: {}]   ;;  %s2921_s10 = inlined_call_operand.hbm [shape: f32[128,128], index: 10, kind: output, shape index: {}]  }
   0x1   :  { %2927 = sst [smem:[#allocation22_spill]] %s2911_s0 }
   0x2   :  { %2928 = sst [smem:[#allocation23_spill]] %s2912_s1 }
   0x3   :  { %2929 = sst [smem:[#allocation24_spill]] %s2921_s10 }
   0x4   :  { %15 = vsyncpa [#allocation6], 0 }
   0x5   :  { %16 = vsyncpa [#allocation9], 0 }
   0x6   :  { %17 = vsyncpa [#allocation12], 0 }
   0x7   :  { %18 = vsyncpa [#allocation15], 0 }
   0x8   :  { %19 = vsyncpa [#allocation7], 0  ;;  %s2568_s13 = smov 0   ;;  %s2570_s14 = smov 0  }
   0x9   :  { %s2572_s15 = smov 0  }
   0xa LB: > { %s2922_s16 = sadd.s32 4294967295, %s2499_s15   ;;  %p1718_p0 = scmp.ge.s32.totalorder %s2499_s15, 1  ;;  %s2499_s15 = sphi %s2572_s15, %s25_s15   ;;  %s2495_s14 = sphi %s2570_s14, %s2944_s14   ;;  %s2491_s13 = sphi %s2568_s13, %s2943_s13  }
   0xb   : > { %p283_p1 = scmp.lt.s32.totalorder %s2499_s15, 4  ;;  %p2588_p2 = scmp.eq.s32.totalorder %s2922_s16, 0 }
   0xc   : > { %s2501_s19 = smov [#allocation8]   ;;  %s2502_s21 = smov [#allocation11]  }
   0xd   : > { %s2930_s17 = scalar_select %p2588_p2, 1, 0 }
   0xe   : > { %p2592_p3 = pnand %p1718_p0, %p283_p1  ;;  %s311_s20 = sshll.u32 %s2501_s19, 4  ;;  %s2596_s20 = int_to_ptr.vmem [resolvable:$true] %s311_s20 }
   0xf   : > { %s340_s22 = sshll.u32 %s2502_s21, 4  ;;  %s2933_s1 = sld [smem:[#allocation23_spill]]  ;;  %s2600_s22 = int_to_ptr.vmem [resolvable:$true] %s340_s22 }
  0x10   : > { %s2931_s18 = scalar_select %p2592_p3, 1, 0 }
  0x11   : > { %p2146_p4 = pneg %p2592_p3 }
  0x13   : > { %p2604_p5 = pnand %p2588_p2, %p2146_p4 }
  0x15   : > { %s2263_s27 = scalar_lea.hbm %s2933_s1, 1024  ;;  %p2617_p7 = pneg %p2604_p5 }
  0x16   : > { %p2264_p6 = scmp.ne.s32.totalorder %s2933_s1, %s2263_s27  ;;  %p2270_p10 = scmp.lt.u32.totalorder %s2263_s27, %s2933_s1 }
  0x18   : > { %p2266_p8 = pnand %p2617_p7, %p2264_p6 }
  0x1a   : > { %p2267_p9 = pneg %p2266_p8 }
  0x1c   : > { %p2272_p11 = pnand %p2270_p10, %p2267_p9 }
  0x1e   : > { %2275 = shalt.err (!%p2272_p11)
}
  0x1f   : > { %s2276_s19 = scalar_lea.vmem %s2596_s20, 1024  ;;  %p2284_p1 = scmp.lt.s32.totalorder %s2596_s20, %s2596_s20 }
  0x20   : > { %p2277_p12 = scmp.ne.s32.totalorder %s2596_s20, %s2276_s19  ;;  %p2285_p4 = scmp.lt.s32.totalorder %s2276_s19, %s2276_s19 }
  0x22   : > { %p2279_p13 = pnand %p2277_p12, %p2617_p7  ;;  %p2286_p6 = por %p2285_p4, %p2284_p1 }
  0x24   : > { %p2280_p0 = pneg %p2279_p13 }
  0x26   : > { %p2287_p8 = pnand %p2286_p6, %p2280_p0 }
  0x28   : > { %2290 = shalt.err (!%p2287_p8)
}
  0x29   : > { %s2503_s21 = smov 64   ;;  %s2504_s25 = smov 4  }
  0x2a   : > { %2152 = dma.hbm_to_vmem [thread:$0]  (!%p2604_p5), %s2933_s1, 1024, %s2596_s20, [#allocation9], %s2503_s21, %s2503_s21, %s2504_s25  }
  0x2b   : > { %s2291_s11 = scalar_lea.hbm %s2915_s4, 1024 }
  0x2c   : > { %p2292_p9 = scmp.ne.s32.totalorder %s2915_s4, %s2291_s11  ;;  %p2298_p12 = scmp.lt.u32.totalorder %s2291_s11, %s2915_s4 }
  0x2e   : > { %p2294_p10 = pnand %p2292_p9, %p2617_p7 }
  0x30   : > { %p2295_p11 = pneg %p2294_p10 }
  0x32   : > { %p2300_p13 = pnand %p2298_p12, %p2295_p11 }
  0x34   : > { %2303 = shalt.err (!%p2300_p13)
}
  0x35   : > { %s2304_s20 = scalar_lea.vmem %s2600_s22, 1024  ;;  %p2312_p6 = scmp.lt.s32.totalorder %s2600_s22, %s2600_s22 }
  0x36   : > { %p2305_p0 = scmp.ne.s32.totalorder %s2600_s22, %s2304_s20  ;;  %p2313_p8 = scmp.lt.s32.totalorder %s2304_s20, %s2304_s20 }
  0x38   : > { %p2307_p1 = pnand %p2305_p0, %p2617_p7  ;;  %p2314_p9 = por %p2313_p8, %p2312_p6 }
  0x3a   : > { %p2308_p4 = pneg %p2307_p1 }
  0x3c   : > { %p2315_p10 = pnand %p2314_p9, %p2308_p4 }
  0x3e   : > { %2318 = shalt.err (!%p2315_p10)
}
  0x3f   : > { %2158 = dma.hbm_to_vmem [thread:$0]  (!%p2604_p5), %s2915_s4, 1024, %s2600_s22, [#allocation12], %s2503_s21, %s2503_s21, %s2504_s25  }
  0x40   : > { %s2935_s26 = sadd.s32 1, %s2495_s14  ;;  %s2505_s27 = smov [#allocation5]  }
  0x41   : > { %p39_p11 = scmp.ge.s32.totalorder %s2935_s26, 3  ;;  %s298_s28 = sshll.u32 %s2505_s27, 4  ;;  %s299_s28 = int_to_ptr.vmem [resolvable:$true] %s298_s28 }
  0x42   : > { %s2936_s29 = smov %s2935_s26  ;;  %s2506_s11 = smov [#allocation10]  }
  0x43   : > { %s2946_s29 = smov (%p39_p11, %s2936_s29), 0  ;;  %s324_s12 = sshll.u32 %s2506_s11, 4  ;;  %s325_s12 = int_to_ptr.vmem [resolvable:$true] %s324_s12 }
  0x44   : > { %s2937_s0 = sld [smem:[#allocation22_spill]] }
  0x4a   : > { %s2319_s1 = scalar_lea.hbm %s2937_s0, 1024 }
  0x4b   : > { %p2320_p12 = scmp.ne.s32.totalorder %s2937_s0, %s2319_s1  ;;  %p2326_p1 = scmp.lt.u32.totalorder %s2319_s1, %s2937_s0 }
  0x4d   : > { %p2322_p13 = pnand %p2320_p12, %p2617_p7 }
  0x4f   : > { %p2323_p0 = pneg %p2322_p13 }
  0x51   : > { %p2328_p4 = pnand %p2326_p1, %p2323_p0 }
  0x53   : > { %2331 = shalt.err (!%p2328_p4)
}
  0x54   : > { %s2332_s26 = scalar_lea.vmem %s299_s28, 1024  ;;  %p2340_p10 = scmp.lt.s32.totalorder %s299_s28, %s299_s28 }
  0x55   : > { %p2333_p6 = scmp.ne.s32.totalorder %s299_s28, %s2332_s26  ;;  %p2341_p11 = scmp.lt.s32.totalorder %s2332_s26, %s2332_s26 }
  0x57   : > { %p2335_p8 = pnand %p2333_p6, %p2617_p7  ;;  %p2342_p2 = por %p2341_p11, %p2340_p10 }
  0x59   : > { %p2336_p9 = pneg %p2335_p8 }
  0x5b   : > { %p2343_p3 = pnand %p2342_p2, %p2336_p9 }
  0x5d   : > { %2346 = shalt.err (!%p2343_p3)
}
  0x5e   : > { %2149 = dma.hbm_to_vmem [thread:$0]  (!%p2604_p5), %s2937_s0, 1024, %s299_s28, [#allocation6], %s2503_s21, %s2503_s21, %s2504_s25  }
  0x5f   : > { %s2347_s19 = scalar_lea.hbm %s2913_s2, 1024 }
  0x60   : > { %p2348_p2 = scmp.ne.s32.totalorder %s2913_s2, %s2347_s19  ;;  %p2354_p13 = scmp.lt.u32.totalorder %s2347_s19, %s2913_s2 }
  0x62   : > { %p2350_p3 = pnand %p2348_p2, %p2617_p7 }
  0x64   : > { %p2351_p12 = pneg %p2350_p3 }
  0x66   : > { %p2356_p0 = pnand %p2354_p13, %p2351_p12 }
  0x68   : > { %2359 = shalt.err (!%p2356_p0)
}
  0x69   : > { %s2360_s26 = scalar_lea.vmem %s325_s12, 1024  ;;  %p2368_p8 = scmp.lt.s32.totalorder %s325_s12, %s325_s12 }
  0x6a   : > { %p2361_p1 = scmp.ne.s32.totalorder %s325_s12, %s2360_s26  ;;  %p2369_p9 = scmp.lt.s32.totalorder %s2360_s26, %s2360_s26 }
  0x6c   : > { %p2363_p4 = pnand %p2361_p1, %p2617_p7  ;;  %p2370_p10 = por %p2369_p9, %p2368_p8 }
  0x6e   : > { %p2364_p6 = pneg %p2363_p4 }
  0x70   : > { %p2371_p11 = pnand %p2370_p10, %p2364_p6 }
  0x72   : > { %2374 = shalt.err (!%p2371_p11)
}
  0x73   : > { %2155 = dma.hbm_to_vmem [thread:$0]  (!%p2604_p5), %s2913_s2, 1024, %s325_s12, [#allocation9], %s2503_s21, %s2503_s21, %s2504_s25  }
  0x74   : > { %s2507_s1 = smov [#allocation13]   ;;  %s2508_s11 = smov [#allocation14]  }
  0x75   : > { %s356_s27 = sshll.u32 %s2507_s1, 4  ;;  %s372_s19 = sshll.u32 %s2508_s11, 4  ;;  %s357_s27 = int_to_ptr.vmem [resolvable:$true] %s356_s27  ;;  %s373_s19 = int_to_ptr.vmem [resolvable:$true] %s372_s19 }
  0x76   : > { %s2375_s22 = scalar_lea.hbm %s2917_s6, 1024 }
  0x77   : > { %p2376_p2 = scmp.ne.s32.totalorder %s2917_s6, %s2375_s22  ;;  %p2382_p13 = scmp.lt.u32.totalorder %s2375_s22, %s2917_s6 }
  0x79   : > { %p2378_p3 = pnand %p2376_p2, %p2617_p7 }
  0x7b   : > { %p2379_p12 = pneg %p2378_p3 }
  0x7d   : > { %p2384_p0 = pnand %p2382_p13, %p2379_p12 }
  0x7f   : > { %2387 = shalt.err (!%p2384_p0)
}
  0x80   : > { %s2388_s12 = scalar_lea.vmem %s357_s27, 1024  ;;  %p2396_p8 = scmp.lt.s32.totalorder %s357_s27, %s357_s27 }
  0x81   : > { %p2389_p1 = scmp.ne.s32.totalorder %s357_s27, %s2388_s12  ;;  %p2397_p9 = scmp.lt.s32.totalorder %s2388_s12, %s2388_s12 }
  0x83   : > { %p2391_p4 = pnand %p2389_p1, %p2617_p7  ;;  %p2398_p10 = por %p2397_p9, %p2396_p8 }
  0x85   : > { %p2392_p6 = pneg %p2391_p4 }
  0x87   : > { %p2399_p11 = pnand %p2398_p10, %p2392_p6 }
  0x89   : > { %2402 = shalt.err (!%p2399_p11)
}
  0x8a   : > { %2161 = dma.hbm_to_vmem [thread:$0]  (!%p2604_p5), %s2917_s6, 1024, %s357_s27, [#allocation12], %s2503_s21, %s2503_s21, %s2504_s25  }
  0x8b   : > { %s2403_s20 = scalar_lea.hbm %s2919_s8, 1024 }
  0x8c   : > { %p2404_p2 = scmp.ne.s32.totalorder %s2919_s8, %s2403_s20  ;;  %p2410_p13 = scmp.lt.u32.totalorder %s2403_s20, %s2919_s8 }
  0x8e   : > { %p2406_p3 = pnand %p2404_p2, %p2617_p7 }
  0x90   : > { %p2407_p12 = pneg %p2406_p3 }
  0x92   : > { %p2412_p0 = pnand %p2410_p13, %p2407_p12 }
  0x94   : > { %2415 = shalt.err (!%p2412_p0)
}
  0x95   : > { %s2416_s28 = scalar_lea.vmem %s373_s19, 1024  ;;  %p2424_p8 = scmp.lt.s32.totalorder %s373_s19, %s373_s19 }
  0x96   : > { %p2417_p1 = scmp.ne.s32.totalorder %s373_s19, %s2416_s28  ;;  %p2425_p9 = scmp.lt.s32.totalorder %s2416_s28, %s2416_s28 }
  0x98   : > { %p2419_p4 = pnand %p2417_p1, %p2617_p7  ;;  %p2426_p10 = por %p2425_p9, %p2424_p8 }
  0x9a   : > { %p2420_p6 = pneg %p2419_p4 }
  0x9c   : > { %p2427_p11 = pnand %p2426_p10, %p2420_p6 }
  0x9e   : > { %2430 = shalt.err (!%p2427_p11)
}
  0x9f   : > { %2164 = dma.hbm_to_vmem [thread:$0]  (!%p2604_p5), %s2919_s8, 1024, %s373_s19, [#allocation15], %s2503_s21, %s2503_s21, %s2504_s25  }
  0xa0   : > { %p2938_p2 = scmp.ne.s32.totalorder %s2931_s18, 0 }
  0xa1   : > { %p2939_p7 = scmp.ne.s32.totalorder (!%p2938_p2), %s2930_s17, 0 }
  0xa2   : > { %391 = sbr.rel (%p2938_p2) target bundleno = 1537 (0x601), region = 60 }
  0xa9   : > { %2470 = dma.done.wait (%p2939_p7), [#allocation6], 1024  }
  0xaa   : > { %2472 = vsyncadd (%p2939_p7), [#allocation6], 4294966272 }
  0xab   : > { %2474 = dma.done.wait (%p2939_p7), [#allocation9], 2048  }
  0xac   : > { %2476 = vsyncadd (%p2939_p7), [#allocation9], 4294965248 }
  0xad   : > { %2478 = dma.done.wait (%p2939_p7), [#allocation12], 2048  }
  0xae   : > { %2480 = vsyncadd (%p2939_p7), [#allocation12], 4294965248 }
  0xaf   : > { %2482 = dma.done.wait (%p2939_p7), [#allocation15], 1024  }
  0xb0   : > { %2484 = vsyncadd (%p2939_p7), [#allocation15], 4294966272  ;;  %p444_p5 = scmp.eq.s32.totalorder %s2491_s13, 0 }
  0xb1   : > { %v2215_v0 = vld [vmem:[#allocation10] sm:$0xff] (%p444_p5)   ;;  %v2216_v1 = vld [vmem:[#allocation10 + $0x8] sm:$0xff] (%p444_p5)   ;;  %v2217_v2 = vld [vmem:[#allocation10 + $0x10] sm:$0xff] (%p444_p5)  }
  0xb2   : > { %448 = sbr.rel (!%p444_p5) target bundleno = 436 (0x1b4), region = 88  ;;  %1878 = vmatprep.subr.bf16.mxu0 (%p444_p5), %v2215_v0  ;;  %2038 = vmatprep.subr.bf16.mxu1 (%p444_p5), %v2215_v0  ;;  %v2218_v3 = vld [vmem:[#allocation10 + $0x18] sm:$0xff] (%p444_p5)   ;;  %v2223_v4 = vld [vmem:[#allocation8] sm:$0xff] (%p444_p5)   ;;  %v2220_v7 = vld [vmem:[#allocation10 + $0x28] sm:$0xff] (%p444_p5)  }
  0xb3   : > { %1879 = vmatpush3.bf16.msra.mxu0 (%p444_p5), %v2215_v0  ;;  %2046 = vmatpush3.bf16.msra.mxu1 (%p444_p5), %v2215_v0  ;;  %v2224_v5 = vld [vmem:[#allocation8 + $0x20] sm:$0xff] (%p444_p5)   ;;  %v2221_v8 = vld [vmem:[#allocation10 + $0x30] sm:$0xff] (%p444_p5)   ;;  %v2222_v9 = vld [vmem:[#allocation10 + $0x38] sm:$0xff] (%p444_p5)  }
  0xb4   : > { %1880 = vmatprep.subr.bf16.mxu0 (%p444_p5), %v2216_v1  ;;  %2039 = vmatprep.subr.bf16.mxu1 (%p444_p5), %v2216_v1  ;;  %v2219_v6 = vld [vmem:[#allocation10 + $0x20] sm:$0xff] (%p444_p5)   ;;  %v2225_v10 = vld [vmem:[#allocation8 + $0x8] sm:$0xff] (%p444_p5)   ;;  %v2227_v12 = vld [vmem:[#allocation8 + $0x10] sm:$0xff] (%p444_p5)  }
  0xb5   : > { %1894 = vmatprep.mubr.bf16.mxu0 (%p444_p5), %v2223_v4  ;;  %1902 = vmatprep.mubr.bf16.mxu1 (%p444_p5), %v2224_v5  ;;  %v2226_v11 = vld [vmem:[#allocation8 + $0x28] sm:$0xff] (%p444_p5)   ;;  %v2228_v13 = vld [vmem:[#allocation8 + $0x30] sm:$0xff] (%p444_p5)   ;;  %v2229_v14 = vld [vmem:[#allocation8 + $0x18] sm:$0xff] (%p444_p5)  }
  0xb6   : > { %v2230_v15 = vld [vmem:[#allocation8 + $0x38] sm:$0xff] (%p444_p5)  }
  0xb7   : > { %1881 = vmatpush3.bf16.msra.mxu0 (%p444_p5), %v2216_v1  ;;  %2047 = vmatpush3.bf16.msra.mxu1 (%p444_p5), %v2216_v1 }
  0xb8   : > { %1882 = vmatprep.subr.bf16.mxu0 (%p444_p5), %v2217_v2  ;;  %2040 = vmatprep.subr.bf16.mxu1 (%p444_p5), %v2217_v2 }
  0xbb   : > { %1883 = vmatpush3.bf16.msra.mxu0 %v2217_v2  ;;  %2048 = vmatpush3.bf16.msra.mxu1 %v2217_v2 }
  0xbc   : > { %1884 = vmatprep.subr.bf16.mxu0 %v2218_v3  ;;  %2041 = vmatprep.subr.bf16.mxu1 %v2218_v3 }
  0xbf   : > { %1885 = vmatpush3.bf16.msra.mxu0 %v2218_v3  ;;  %2049 = vmatpush3.bf16.msra.mxu1 %v2218_v3 }
  0xc0   : > { %1886 = vmatprep.subr.bf16.mxu0 %v2219_v6  ;;  %2042 = vmatprep.subr.bf16.mxu1 %v2219_v6 }
  0xc3   : > { %1887 = vmatpush3.bf16.msra.mxu0 %v2219_v6  ;;  %2050 = vmatpush3.bf16.msra.mxu1 %v2219_v6 }
  0xc4   : > { %1888 = vmatprep.subr.bf16.mxu0 %v2220_v7  ;;  %2043 = vmatprep.subr.bf16.mxu1 %v2220_v7 }
  0xc7   : > { %1889 = vmatpush3.bf16.msra.mxu0 %v2220_v7  ;;  %2051 = vmatpush3.bf16.msra.mxu1 %v2220_v7 }
  0xc8   : > { %1890 = vmatprep.subr.bf16.mxu0 %v2221_v8  ;;  %2044 = vmatprep.subr.bf16.mxu1 %v2221_v8 }
  0xcb   : > { %1891 = vmatpush3.bf16.msra.mxu0 %v2221_v8  ;;  %2052 = vmatpush3.bf16.msra.mxu1 %v2221_v8 }
  0xcc   : > { %1892 = vmatprep.subr.bf16.mxu0 %v2222_v9  ;;  %2045 = vmatprep.subr.bf16.mxu1 %v2222_v9 }
  0xcf   : > { %1893 = vmatpush3.bf16.msra.mxu0 %v2222_v9  ;;  %2053 = vmatpush3.bf16.msra.mxu1 %v2222_v9 }
  0xd2   : > { %1895 = vmatmul.mubr.bf16.vlgmr.msra.gmra.mrb[0].mxu0 %v2225_v10  ;;  %1903 = vmatmul.mubr.bf16.vlgmr.msra.gmra.mrb[0].mxu1 %v2226_v11 }
  0xd3   : > { %1898 = vmatprep.mubr.bf16.mxu0 %v2227_v12  ;;  %1906 = vmatprep.mubr.bf16.mxu1 %v2228_v13 }
  0xda   : > { %1899 = vmatmul.mubr.bf16.gmra.mrb[4].mxu0 %v2229_v14  ;;  %1907 = vmatmul.mubr.bf16.gmra.mrb[4].mxu1 %v2230_v15 }
 0x1a5   : > { %v1896_v16 = vpop.f32.mrb[0].mxu0  ;;  %v1904_v17 = vpop.f32.mrb[0].mxu1 }
 0x1a6   : > { %v611_v18 = vpop.f32.mrb[1].mxu0  ;;  %v643_v19 = vpop.f32.mrb[1].mxu1 }
 0x1a7   : > { %v1897_v20 = vpop.f32.mrb[2].mxu0  ;;  %v1905_v21 = vpop.f32.mrb[2].mxu1 }
 0x1a8   : > { %v675_v22 = vpack.c.bf16 %v1897_v20, %v1896_v16  ;;  %v679_v23 = vpack.c.bf16 %v1905_v21, %v1904_v17  ;;  %v614_v24 = vpop.f32.mrb[3].mxu0  ;;  %v646_v25 = vpop.f32.mrb[3].mxu1 }
 0x1a9   : > { %v674_v26 = vpack.c.bf16 %v614_v24, %v611_v18  ;;  %v678_v27 = vpack.c.bf16 %v646_v25, %v643_v19 }
 0x1aa   : > { %683 = vst [vmem:[#allocation4 + $0x8] sm:$0xff] %v675_v22  ;;  %687 = vst [vmem:[#allocation4 + $0x28] sm:$0xff] %v679_v23 }
 0x1ab   : > { %682 = vst [vmem:[#allocation4] sm:$0xff] %v674_v26  ;;  %686 = vst [vmem:[#allocation4 + $0x20] sm:$0xff] %v678_v27 }
 0x1ad   : > { %v1900_v28 = vpop.f32.mrb[4].mxu0  ;;  %v1908_v29 = vpop.f32.mrb[4].mxu1 }
 0x1ae   : > { %v627_v30 = vpop.f32.mrb[5].mxu0  ;;  %v659_v31 = vpop.f32.mrb[5].mxu1 }
 0x1af   : > { %v1901_v32 = vpop.f32.mrb[6].mxu0  ;;  %v1909_v33 = vpop.f32.mrb[6].mxu1 }
 0x1b0   : > { %v677_v34 = vpack.c.bf16 %v1901_v32, %v1900_v28  ;;  %v681_v35 = vpack.c.bf16 %v1909_v33, %v1908_v29  ;;  %v630_v36 = vpop.f32.mrb[7].mxu0  ;;  %v662_v37 = vpop.f32.mrb[7].mxu1 }
 0x1b1   : > { %v676_v38 = vpack.c.bf16 %v630_v36, %v627_v30  ;;  %v680_v39 = vpack.c.bf16 %v662_v37, %v659_v31 }
 0x1b2   : > { %685 = vst [vmem:[#allocation4 + $0x18] sm:$0xff] %v677_v34  ;;  %689 = vst [vmem:[#allocation4 + $0x38] sm:$0xff] %v681_v35 }
 0x1b3   : > { %684 = vst [vmem:[#allocation4 + $0x10] sm:$0xff] %v676_v38  ;;  %688 = vst [vmem:[#allocation4 + $0x30] sm:$0xff] %v680_v39 }
 0x1b4 PF: > { %p690_p3 = scmp.eq.s32.totalorder %s2491_s13, 1 }
 0x1b5   : > { %v2231_v40 = vld [vmem:[#allocation11] sm:$0xff] (%p690_p3)   ;;  %v2232_v41 = vld [vmem:[#allocation11 + $0x8] sm:$0xff] (%p690_p3)   ;;  %v2233_v42 = vld [vmem:[#allocation11 + $0x10] sm:$0xff] (%p690_p3)  }
 0x1b6   : > { %694 = sbr.rel (!%p690_p3) target bundleno = 696 (0x2b8), region = 92  ;;  %1910 = vmatprep.subr.bf16.mxu0 (%p690_p3), %v2231_v40  ;;  %2054 = vmatprep.subr.bf16.mxu1 (%p690_p3), %v2231_v40  ;;  %v2234_v43 = vld [vmem:[#allocation11 + $0x18] sm:$0xff] (%p690_p3)   ;;  %v695_v44 = vld [vmem:[#allocation2] sm:$0xff] (%p690_p3)  ;;  %v2236_v47 = vld [vmem:[#allocation11 + $0x28] sm:$0xff] (%p690_p3)  }
 0x1b7   : > { %1911 = vmatpush3.bf16.msra.mxu0 (%p690_p3), %v2231_v40  ;;  %2062 = vmatpush3.bf16.msra.mxu1 (%p690_p3), %v2231_v40  ;;  %v699_v45 = vld [vmem:[#allocation2 + $0x20] sm:$0xff] (%p690_p3)  ;;  %v2237_v48 = vld [vmem:[#allocation11 + $0x30] sm:$0xff] (%p690_p3)   ;;  %v2238_v49 = vld [vmem:[#allocation11 + $0x38] sm:$0xff] (%p690_p3)  }
 0x1b8   : > { %1912 = vmatprep.subr.bf16.mxu0 (%p690_p3), %v2232_v41  ;;  %2055 = vmatprep.subr.bf16.mxu1 (%p690_p3), %v2232_v41  ;;  %v2235_v46 = vld [vmem:[#allocation11 + $0x20] sm:$0xff] (%p690_p3)   ;;  %v696_v50 = vld [vmem:[#allocation2 + $0x8] sm:$0xff] (%p690_p3)  ;;  %v697_v52 = vld [vmem:[#allocation2 + $0x10] sm:$0xff] (%p690_p3) }
 0x1b9   : > { %1926 = vmatprep.mubr.bf16.mxu0 (%p690_p3), %v695_v44  ;;  %1934 = vmatprep.mubr.bf16.mxu1 (%p690_p3), %v699_v45  ;;  %v700_v51 = vld [vmem:[#allocation2 + $0x28] sm:$0xff] (%p690_p3)  ;;  %v701_v53 = vld [vmem:[#allocation2 + $0x30] sm:$0xff] (%p690_p3)  ;;  %v698_v54 = vld [vmem:[#allocation2 + $0x18] sm:$0xff] (%p690_p3) }
 0x1ba   : > { %v702_v55 = vld [vmem:[#allocation2 + $0x38] sm:$0xff] (%p690_p3) }
 0x1bb   : > { %1913 = vmatpush3.bf16.msra.mxu0 (%p690_p3), %v2232_v41  ;;  %2063 = vmatpush3.bf16.msra.mxu1 (%p690_p3), %v2232_v41 }
 0x1bc   : > { %1914 = vmatprep.subr.bf16.mxu0 (%p690_p3), %v2233_v42  ;;  %2056 = vmatprep.subr.bf16.mxu1 (%p690_p3), %v2233_v42 }
 0x1bf   : > { %1915 = vmatpush3.bf16.msra.mxu0 %v2233_v42  ;;  %2064 = vmatpush3.bf16.msra.mxu1 %v2233_v42 }
 0x1c0   : > { %1916 = vmatprep.subr.bf16.mxu0 %v2234_v43  ;;  %2057 = vmatprep.subr.bf16.mxu1 %v2234_v43 }
 0x1c3   : > { %1917 = vmatpush3.bf16.msra.mxu0 %v2234_v43  ;;  %2065 = vmatpush3.bf16.msra.mxu1 %v2234_v43 }
 0x1c4   : > { %1918 = vmatprep.subr.bf16.mxu0 %v2235_v46  ;;  %2058 = vmatprep.subr.bf16.mxu1 %v2235_v46 }
 0x1c7   : > { %1919 = vmatpush3.bf16.msra.mxu0 %v2235_v46  ;;  %2066 = vmatpush3.bf16.msra.mxu1 %v2235_v46 }
 0x1c8   : > { %1920 = vmatprep.subr.bf16.mxu0 %v2236_v47  ;;  %2059 = vmatprep.subr.bf16.mxu1 %v2236_v47 }
 0x1cb   : > { %1921 = vmatpush3.bf16.msra.mxu0 %v2236_v47  ;;  %2067 = vmatpush3.bf16.msra.mxu1 %v2236_v47 }
 0x1cc   : > { %1922 = vmatprep.subr.bf16.mxu0 %v2237_v48  ;;  %2060 = vmatprep.subr.bf16.mxu1 %v2237_v48 }
 0x1cf   : > { %1923 = vmatpush3.bf16.msra.mxu0 %v2237_v48  ;;  %2068 = vmatpush3.bf16.msra.mxu1 %v2237_v48 }
 0x1d0   : > { %1924 = vmatprep.subr.bf16.mxu0 %v2238_v49  ;;  %2061 = vmatprep.subr.bf16.mxu1 %v2238_v49 }
 0x1d3   : > { %1925 = vmatpush3.bf16.msra.mxu0 %v2238_v49  ;;  %2069 = vmatpush3.bf16.msra.mxu1 %v2238_v49 }
 0x1d6   : > { %1927 = vmatmul.mubr.bf16.vlgmr.msra.gmra.mrb[0].mxu0 %v696_v50  ;;  %1935 = vmatmul.mubr.bf16.vlgmr.msra.gmra.mrb[0].mxu1 %v700_v51 }
 0x1d7   : > { %1930 = vmatprep.mubr.bf16.mxu0 %v697_v52  ;;  %1938 = vmatprep.mubr.bf16.mxu1 %v701_v53 }
 0x1de   : > { %1931 = vmatmul.mubr.bf16.gmra.mrb[4].mxu0 %v698_v54  ;;  %1939 = vmatmul.mubr.bf16.gmra.mrb[4].mxu1 %v702_v55 }
 0x2a9   : > { %v1928_v56 = vpop.f32.mrb[0].mxu0  ;;  %v1936_v57 = vpop.f32.mrb[0].mxu1 }
 0x2aa   : > { %v801_v58 = vpop.f32.mrb[1].mxu0  ;;  %v833_v59 = vpop.f32.mrb[1].mxu1 }
 0x2ab   : > { %v1929_v60 = vpop.f32.mrb[2].mxu0  ;;  %v1937_v61 = vpop.f32.mrb[2].mxu1 }
 0x2ac   : > { %v865_v62 = vpack.c.bf16 %v1929_v60, %v1928_v56  ;;  %v869_v63 = vpack.c.bf16 %v1937_v61, %v1936_v57  ;;  %v804_v0 = vpop.f32.mrb[3].mxu0  ;;  %v836_v1 = vpop.f32.mrb[3].mxu1 }
 0x2ad   : > { %v864_v2 = vpack.c.bf16 %v804_v0, %v801_v58  ;;  %v868_v3 = vpack.c.bf16 %v836_v1, %v833_v59 }
 0x2ae   : > { %873 = vst [vmem:[#allocation4 + $0x8] sm:$0xff] %v865_v62  ;;  %877 = vst [vmem:[#allocation4 + $0x28] sm:$0xff] %v869_v63 }
 0x2af   : > { %872 = vst [vmem:[#allocation4] sm:$0xff] %v864_v2  ;;  %876 = vst [vmem:[#allocation4 + $0x20] sm:$0xff] %v868_v3 }
 0x2b1   : > { %v1932_v4 = vpop.f32.mrb[4].mxu0  ;;  %v1940_v5 = vpop.f32.mrb[4].mxu1 }
 0x2b2   : > { %v817_v6 = vpop.f32.mrb[5].mxu0  ;;  %v849_v7 = vpop.f32.mrb[5].mxu1 }
 0x2b3   : > { %v1933_v8 = vpop.f32.mrb[6].mxu0  ;;  %v1941_v9 = vpop.f32.mrb[6].mxu1 }
 0x2b4   : > { %v867_v10 = vpack.c.bf16 %v1933_v8, %v1932_v4  ;;  %v871_v11 = vpack.c.bf16 %v1941_v9, %v1940_v5  ;;  %v820_v12 = vpop.f32.mrb[7].mxu0  ;;  %v852_v13 = vpop.f32.mrb[7].mxu1 }
 0x2b5   : > { %v866_v14 = vpack.c.bf16 %v820_v12, %v817_v6  ;;  %v870_v15 = vpack.c.bf16 %v852_v13, %v849_v7 }
 0x2b6   : > { %875 = vst [vmem:[#allocation4 + $0x18] sm:$0xff] %v867_v10  ;;  %879 = vst [vmem:[#allocation4 + $0x38] sm:$0xff] %v871_v11 }
 0x2b7   : > { %874 = vst [vmem:[#allocation4 + $0x10] sm:$0xff] %v866_v14  ;;  %878 = vst [vmem:[#allocation4 + $0x30] sm:$0xff] %v870_v15 }
 0x2b8 PF: > { %p880_p12 = scmp.eq.s32.totalorder %s2491_s13, 2 }
 0x2b9   : > { %v2239_v16 = vld [vmem:[#allocation13] sm:$0xff] (%p880_p12)   ;;  %v2240_v17 = vld [vmem:[#allocation13 + $0x8] sm:$0xff] (%p880_p12)   ;;  %v2241_v18 = vld [vmem:[#allocation13 + $0x10] sm:$0xff] (%p880_p12)  }
 0x2ba   : > { %884 = sbr.rel (!%p880_p12) target bundleno = 956 (0x3bc), region = 96  ;;  %1942 = vmatprep.subr.bf16.mxu0 (%p880_p12), %v2239_v16  ;;  %2070 = vmatprep.subr.bf16.mxu1 (%p880_p12), %v2239_v16  ;;  %v2242_v19 = vld [vmem:[#allocation13 + $0x18] sm:$0xff] (%p880_p12)   ;;  %v885_v20 = vld [vmem:[#allocation3] sm:$0xff] (%p880_p12)  ;;  %v2244_v23 = vld [vmem:[#allocation13 + $0x28] sm:$0xff] (%p880_p12)  }
 0x2bb   : > { %1943 = vmatpush3.bf16.msra.mxu0 (%p880_p12), %v2239_v16  ;;  %2078 = vmatpush3.bf16.msra.mxu1 (%p880_p12), %v2239_v16  ;;  %v889_v21 = vld [vmem:[#allocation3 + $0x20] sm:$0xff] (%p880_p12)  ;;  %v2245_v24 = vld [vmem:[#allocation13 + $0x30] sm:$0xff] (%p880_p12)   ;;  %v2246_v25 = vld [vmem:[#allocation13 + $0x38] sm:$0xff] (%p880_p12)  }
 0x2bc   : > { %1944 = vmatprep.subr.bf16.mxu0 (%p880_p12), %v2240_v17  ;;  %2071 = vmatprep.subr.bf16.mxu1 (%p880_p12), %v2240_v17  ;;  %v2243_v22 = vld [vmem:[#allocation13 + $0x20] sm:$0xff] (%p880_p12)   ;;  %v886_v26 = vld [vmem:[#allocation3 + $0x8] sm:$0xff] (%p880_p12)  ;;  %v887_v28 = vld [vmem:[#allocation3 + $0x10] sm:$0xff] (%p880_p12) }
 0x2bd   : > { %1958 = vmatprep.mubr.bf16.mxu0 (%p880_p12), %v885_v20  ;;  %1966 = vmatprep.mubr.bf16.mxu1 (%p880_p12), %v889_v21  ;;  %v890_v27 = vld [vmem:[#allocation3 + $0x28] sm:$0xff] (%p880_p12)  ;;  %v891_v29 = vld [vmem:[#allocation3 + $0x30] sm:$0xff] (%p880_p12)  ;;  %v888_v30 = vld [vmem:[#allocation3 + $0x18] sm:$0xff] (%p880_p12) }
 0x2be   : > { %v892_v31 = vld [vmem:[#allocation3 + $0x38] sm:$0xff] (%p880_p12) }
 0x2bf   : > { %1945 = vmatpush3.bf16.msra.mxu0 (%p880_p12), %v2240_v17  ;;  %2079 = vmatpush3.bf16.msra.mxu1 (%p880_p12), %v2240_v17 }
 0x2c0   : > { %1946 = vmatprep.subr.bf16.mxu0 (%p880_p12), %v2241_v18  ;;  %2072 = vmatprep.subr.bf16.mxu1 (%p880_p12), %v2241_v18 }
 0x2c3   : > { %1947 = vmatpush3.bf16.msra.mxu0 %v2241_v18  ;;  %2080 = vmatpush3.bf16.msra.mxu1 %v2241_v18 }
 0x2c4   : > { %1948 = vmatprep.subr.bf16.mxu0 %v2242_v19  ;;  %2073 = vmatprep.subr.bf16.mxu1 %v2242_v19 }
 0x2c7   : > { %1949 = vmatpush3.bf16.msra.mxu0 %v2242_v19  ;;  %2081 = vmatpush3.bf16.msra.mxu1 %v2242_v19 }
 0x2c8   : > { %1950 = vmatprep.subr.bf16.mxu0 %v2243_v22  ;;  %2074 = vmatprep.subr.bf16.mxu1 %v2243_v22 }
 0x2cb   : > { %1951 = vmatpush3.bf16.msra.mxu0 %v2243_v22  ;;  %2082 = vmatpush3.bf16.msra.mxu1 %v2243_v22 }
 0x2cc   : > { %1952 = vmatprep.subr.bf16.mxu0 %v2244_v23  ;;  %2075 = vmatprep.subr.bf16.mxu1 %v2244_v23 }
 0x2cf   : > { %1953 = vmatpush3.bf16.msra.mxu0 %v2244_v23  ;;  %2083 = vmatpush3.bf16.msra.mxu1 %v2244_v23 }
 0x2d0   : > { %1954 = vmatprep.subr.bf16.mxu0 %v2245_v24  ;;  %2076 = vmatprep.subr.bf16.mxu1 %v2245_v24 }
 0x2d3   : > { %1955 = vmatpush3.bf16.msra.mxu0 %v2245_v24  ;;  %2084 = vmatpush3.bf16.msra.mxu1 %v2245_v24 }
 0x2d4   : > { %1956 = vmatprep.subr.bf16.mxu0 %v2246_v25  ;;  %2077 = vmatprep.subr.bf16.mxu1 %v2246_v25 }
 0x2d7   : > { %1957 = vmatpush3.bf16.msra.mxu0 %v2246_v25  ;;  %2085 = vmatpush3.bf16.msra.mxu1 %v2246_v25 }
 0x2da   : > { %1959 = vmatmul.mubr.bf16.vlgmr.msra.gmra.mrb[0].mxu0 %v886_v26  ;;  %1967 = vmatmul.mubr.bf16.vlgmr.msra.gmra.mrb[0].mxu1 %v890_v27 }
 0x2db   : > { %1962 = vmatprep.mubr.bf16.mxu0 %v887_v28  ;;  %1970 = vmatprep.mubr.bf16.mxu1 %v891_v29 }
 0x2e2   : > { %1963 = vmatmul.mubr.bf16.gmra.mrb[4].mxu0 %v888_v30  ;;  %1971 = vmatmul.mubr.bf16.gmra.mrb[4].mxu1 %v892_v31 }
 0x3ad   : > { %v1960_v32 = vpop.f32.mrb[0].mxu0  ;;  %v1968_v33 = vpop.f32.mrb[0].mxu1 }
 0x3ae   : > { %v991_v34 = vpop.f32.mrb[1].mxu0  ;;  %v1023_v35 = vpop.f32.mrb[1].mxu1 }
 0x3af   : > { %v1961_v36 = vpop.f32.mrb[2].mxu0  ;;  %v1969_v37 = vpop.f32.mrb[2].mxu1 }
 0x3b0   : > { %v1055_v38 = vpack.c.bf16 %v1961_v36, %v1960_v32  ;;  %v1059_v39 = vpack.c.bf16 %v1969_v37, %v1968_v33  ;;  %v994_v40 = vpop.f32.mrb[3].mxu0  ;;  %v1026_v41 = vpop.f32.mrb[3].mxu1 }
 0x3b1   : > { %v1054_v42 = vpack.c.bf16 %v994_v40, %v991_v34  ;;  %v1058_v43 = vpack.c.bf16 %v1026_v41, %v1023_v35 }
 0x3b2   : > { %1063 = vst [vmem:[#allocation4 + $0x8] sm:$0xff] %v1055_v38  ;;  %1067 = vst [vmem:[#allocation4 + $0x28] sm:$0xff] %v1059_v39 }
 0x3b3   : > { %1062 = vst [vmem:[#allocation4] sm:$0xff] %v1054_v42  ;;  %1066 = vst [vmem:[#allocation4 + $0x20] sm:$0xff] %v1058_v43 }
 0x3b5   : > { %v1964_v44 = vpop.f32.mrb[4].mxu0  ;;  %v1972_v45 = vpop.f32.mrb[4].mxu1 }
 0x3b6   : > { %v1007_v46 = vpop.f32.mrb[5].mxu0  ;;  %v1039_v47 = vpop.f32.mrb[5].mxu1 }
 0x3b7   : > { %v1965_v48 = vpop.f32.mrb[6].mxu0  ;;  %v1973_v49 = vpop.f32.mrb[6].mxu1 }
 0x3b8   : > { %v1057_v50 = vpack.c.bf16 %v1965_v48, %v1964_v44  ;;  %v1061_v51 = vpack.c.bf16 %v1973_v49, %v1972_v45  ;;  %v1010_v52 = vpop.f32.mrb[7].mxu0  ;;  %v1042_v53 = vpop.f32.mrb[7].mxu1 }
 0x3b9   : > { %v1056_v54 = vpack.c.bf16 %v1010_v52, %v1007_v46  ;;  %v1060_v55 = vpack.c.bf16 %v1042_v53, %v1039_v47 }
 0x3ba   : > { %1065 = vst [vmem:[#allocation4 + $0x18] sm:$0xff] %v1057_v50  ;;  %1069 = vst [vmem:[#allocation4 + $0x38] sm:$0xff] %v1061_v51 }
 0x3bb   : > { %1064 = vst [vmem:[#allocation4 + $0x10] sm:$0xff] %v1056_v54  ;;  %1068 = vst [vmem:[#allocation4 + $0x30] sm:$0xff] %v1060_v55 }
 0x3bc PF: > { %v1086_v56 = vld [vmem:[#allocation4] sm:$0xff]  ;;  %v1087_v57 = vld [vmem:[#allocation4 + $0x8] sm:$0xff]  ;;  %v2251_v4 = vld [vmem:[#allocation5 + $0x10] sm:$0xff]   ;;  %p1775_p13 = scmp.ne.s32.totalorder %s2491_s13, 0 }
 0x3bd   : > { %1974 = vmatprep.subr.bf16.mxu0 %v1086_v56  ;;  %2086 = vmatprep.subr.bf16.mxu1 %v1086_v56  ;;  %v2247_v59 = vld [vmem:[#allocation5] sm:$0xff]   ;;  %v1091_v63 = vld [vmem:[#allocation4 + $0x28] sm:$0xff]  ;;  %v2252_v5 = vld [vmem:[#allocation5 + $0x30] sm:$0xff]  }
 0x3be   : > { %1975 = vmatpush3.bf16.msra.mxu0 %v1086_v56  ;;  %2094 = vmatpush3.bf16.msra.mxu1 %v1086_v56  ;;  %v2248_v60 = vld [vmem:[#allocation5 + $0x20] sm:$0xff]   ;;  %v2249_v2 = vld [vmem:[#allocation5 + $0x8] sm:$0xff]   ;;  %v2253_v6 = vld [vmem:[#allocation5 + $0x18] sm:$0xff]  }
 0x3bf   : > { %1976 = vmatprep.subr.bf16.mxu0 %v1087_v57  ;;  %2087 = vmatprep.subr.bf16.mxu1 %v1087_v57  ;;  %v1090_v62 = vld [vmem:[#allocation4 + $0x20] sm:$0xff]  ;;  %v2250_v3 = vld [vmem:[#allocation5 + $0x28] sm:$0xff]   ;;  %v2254_v7 = vld [vmem:[#allocation5 + $0x38] sm:$0xff]  }
 0x3c0   : > { %1990 = vmatprep.mubr.bf16.mxu0 %v2247_v59  ;;  %1998 = vmatprep.mubr.bf16.mxu1 %v2248_v60  ;;  %v1776_v24 = vld [vmem:[%s2914_s3] ss:$0 sm:$0xff] (!%p1775_p13) }
 0x3c1   : > { %v1089_v61 = vld [vmem:[#allocation4 + $0x18] sm:$0xff] }
 0x3c2   : > { %v1088_v58 = vld [vmem:[#allocation4 + $0x10] sm:$0xff]  ;;  %1977 = vmatpush3.bf16.msra.mxu0 %v1087_v57  ;;  %2095 = vmatpush3.bf16.msra.mxu1 %v1087_v57  ;;  %v1093_v1 = vld [vmem:[#allocation4 + $0x38] sm:$0xff] }
 0x3c3   : > { %1978 = vmatprep.subr.bf16.mxu0 %v1088_v58  ;;  %2088 = vmatprep.subr.bf16.mxu1 %v1088_v58  ;;  %v1092_v0 = vld [vmem:[#allocation4 + $0x30] sm:$0xff] }
 0x3c6   : > { %1979 = vmatpush3.bf16.msra.mxu0 %v1088_v58  ;;  %2096 = vmatpush3.bf16.msra.mxu1 %v1088_v58 }
 0x3c7   : > { %1980 = vmatprep.subr.bf16.mxu0 %v1089_v61  ;;  %2089 = vmatprep.subr.bf16.mxu1 %v1089_v61 }
 0x3ca   : > { %1981 = vmatpush3.bf16.msra.mxu0 %v1089_v61  ;;  %2097 = vmatpush3.bf16.msra.mxu1 %v1089_v61 }
 0x3cb   : > { %1982 = vmatprep.subr.bf16.mxu0 %v1090_v62  ;;  %2090 = vmatprep.subr.bf16.mxu1 %v1090_v62 }
 0x3ce   : > { %1983 = vmatpush3.bf16.msra.mxu0 %v1090_v62  ;;  %2098 = vmatpush3.bf16.msra.mxu1 %v1090_v62 }
 0x3cf   : > { %1984 = vmatprep.subr.bf16.mxu0 %v1091_v63  ;;  %2091 = vmatprep.subr.bf16.mxu1 %v1091_v63 }
 0x3d2   : > { %1985 = vmatpush3.bf16.msra.mxu0 %v1091_v63  ;;  %2099 = vmatpush3.bf16.msra.mxu1 %v1091_v63 }
 0x3d3   : > { %1986 = vmatprep.subr.bf16.mxu0 %v1092_v0  ;;  %2092 = vmatprep.subr.bf16.mxu1 %v1092_v0 }
 0x3d6   : > { %1987 = vmatpush3.bf16.msra.mxu0 %v1092_v0  ;;  %2100 = vmatpush3.bf16.msra.mxu1 %v1092_v0 }
 0x3d7   : > { %1988 = vmatprep.subr.bf16.mxu0 %v1093_v1  ;;  %2093 = vmatprep.subr.bf16.mxu1 %v1093_v1 }
 0x3da   : > { %1989 = vmatpush3.bf16.msra.mxu0 %v1093_v1  ;;  %2101 = vmatpush3.bf16.msra.mxu1 %v1093_v1 }
 0x3dd   : > { %1991 = vmatmul.mubr.bf16.vlgmr.msra.gmra.mrb[0].mxu0 %v2249_v2  ;;  %1999 = vmatmul.mubr.bf16.vlgmr.msra.gmra.mrb[0].mxu1 %v2250_v3 }
 0x3de   : > { %1994 = vmatprep.mubr.bf16.mxu0 %v2251_v4  ;;  %2002 = vmatprep.mubr.bf16.mxu1 %v2252_v5 }
 0x3e5   : > { %1995 = vmatmul.mubr.bf16.gmra.mrb[4].mxu0 %v2253_v6  ;;  %2003 = vmatmul.mubr.bf16.gmra.mrb[4].mxu1 %v2254_v7 }
 0x4b0   : > { %v2778_v8 = vpop.f32.mrb[0].mxu0  ;;  %v2780_v9 = vpop.f32.mrb[0].mxu1 }
 0x4b1   : > { %v2782_v10 = vpop.f32.mrb[1].mxu0  ;;  %v2784_v11 = vpop.f32.mrb[1].mxu1  ;;  %v1251_v27 = vadd.f32 (!%p1775_p13), %v2778_v8, %v1776_v24  ;;  %v1259_v47 = vadd.f32 (!%p1775_p13), %v2780_v9, %v1776_v24 }
 0x4b2   : > { %v2786_v12 = vpop.f32.mrb[2].mxu0  ;;  %v2788_v13 = vpop.f32.mrb[2].mxu1  ;;  %v1249_v25 = vadd.f32 (!%p1775_p13), %v1776_v24, %v2782_v10  ;;  %v1257_v43 = vadd.f32 (!%p1775_p13), %v1776_v24, %v2784_v11 }
 0x4b3   : > { %v2790_v14 = vpop.f32.mrb[3].mxu0  ;;  %v2792_v15 = vpop.f32.mrb[3].mxu1  ;;  %v1252_v28 = vadd.f32 (!%p1775_p13), %v2786_v12, %v1776_v24  ;;  %v1267_v35 = vmax.f32 (!%p1775_p13), %v1251_v27, 0.0  ;;  %v1260_v48 = vadd.f32 (!%p1775_p13), %v2788_v13, %v1776_v24  ;;  %v1275_v53 = vmax.f32 (!%p1775_p13), %v1259_v47, 0.0 }
 0x4b4   : > { %v1250_v26 = vadd.f32 (!%p1775_p13), %v1776_v24, %v2790_v14  ;;  %v1265_v33 = vmax.f32 (!%p1775_p13), %v1249_v25, 0.0  ;;  %v1258_v44 = vadd.f32 (!%p1775_p13), %v1776_v24, %v2792_v15  ;;  %v1273_v49 = vmax.f32 (!%p1775_p13), %v1257_v43, 0.0 }
 0x4b5   : > { %1241 = sbr.rel (%p1775_p13) target bundleno = 1219 (0x4c3), region = 100  ;;  %v1268_v36 = vmax.f32 (!%p1775_p13), %v1252_v28, 0.0  ;;  %v1276_v54 = vmax.f32 (!%p1775_p13), %v1260_v48, 0.0 }
 0x4b6   : > { %v1266_v34 = vmax.f32 (!%p1775_p13), %v1250_v26, 0.0  ;;  %v1274_v50 = vmax.f32 (!%p1775_p13), %v1258_v44, 0.0 }
 0x4b7   : > { %v1282_v42 = vpack.c.bf16 (!%p1775_p13), %v1268_v36, %v1267_v35  ;;  %v1286_v60 = vpack.c.bf16 (!%p1775_p13), %v1276_v54, %v1275_v53 }
 0x4b8   : > { %v2794_v16 = vpop.f32.mrb[4].mxu0  ;;  %v2796_v17 = vpop.f32.mrb[4].mxu1  ;;  %v1281_v41 = vpack.c.bf16 (!%p1775_p13), %v1266_v34, %v1265_v33  ;;  %v1285_v57 = vpack.c.bf16 (!%p1775_p13), %v1274_v50, %v1273_v49 }
 0x4b9   : > { %v2798_v18 = vpop.f32.mrb[5].mxu0  ;;  %v2800_v19 = vpop.f32.mrb[5].mxu1  ;;  %v1255_v31 = vadd.f32 (!%p1775_p13), %v2794_v16, %v1776_v24  ;;  %1294 = vst [vmem:[#allocation2 + $0x8] sm:$0xff] (!%p1775_p13), %v1282_v42  ;;  %v1263_v55 = vadd.f32 (!%p1775_p13), %v2796_v17, %v1776_v24  ;;  %1298 = vst [vmem:[#allocation2 + $0x28] sm:$0xff] (!%p1775_p13), %v1286_v60 }
 0x4ba   : > { %v2802_v20 = vpop.f32.mrb[6].mxu0  ;;  %v2804_v21 = vpop.f32.mrb[6].mxu1  ;;  %v1253_v29 = vadd.f32 (!%p1775_p13), %v1776_v24, %v2798_v18  ;;  %1293 = vst [vmem:[#allocation2] sm:$0xff] (!%p1775_p13), %v1281_v41  ;;  %v1261_v51 = vadd.f32 (!%p1775_p13), %v1776_v24, %v2800_v19  ;;  %1297 = vst [vmem:[#allocation2 + $0x20] sm:$0xff] (!%p1775_p13), %v1285_v57 }
 0x4bb   : > { %v2806_v22 = vpop.f32.mrb[7].mxu0  ;;  %v2808_v23 = vpop.f32.mrb[7].mxu1  ;;  %v1256_v32 = vadd.f32 (!%p1775_p13), %v2802_v20, %v1776_v24  ;;  %v1271_v39 = vmax.f32 (!%p1775_p13), %v1255_v31, 0.0  ;;  %v1264_v56 = vadd.f32 (!%p1775_p13), %v2804_v21, %v1776_v24  ;;  %v1279_v61 = vmax.f32 (!%p1775_p13), %v1263_v55, 0.0 }
 0x4bc   : > { %v1254_v30 = vadd.f32 %v1776_v24, %v2806_v22  ;;  %v1269_v37 = vmax.f32 %v1253_v29, 0.0  ;;  %v1262_v52 = vadd.f32 %v1776_v24, %v2808_v23  ;;  %v1277_v58 = vmax.f32 %v1261_v51, 0.0 }
 0x4bd   : > { %v1272_v40 = vmax.f32 %v1256_v32, 0.0  ;;  %v1280_v62 = vmax.f32 %v1264_v56, 0.0 }
 0x4be   : > { %v1270_v38 = vmax.f32 %v1254_v30, 0.0  ;;  %v1278_v59 = vmax.f32 %v1262_v52, 0.0 }
 0x4bf   : > { %v1284_v46 = vpack.c.bf16 %v1272_v40, %v1271_v39  ;;  %v1288_v0 = vpack.c.bf16 %v1280_v62, %v1279_v61 }
 0x4c0   : > { %v1283_v45 = vpack.c.bf16 %v1270_v38, %v1269_v37  ;;  %v1287_v63 = vpack.c.bf16 %v1278_v59, %v1277_v58 }
 0x4c1   : > { %1296 = vst [vmem:[#allocation2 + $0x18] sm:$0xff] %v1284_v46  ;;  %1300 = vst [vmem:[#allocation2 + $0x38] sm:$0xff] %v1288_v0 }
 0x4c2   : > { %1295 = vst [vmem:[#allocation2 + $0x10] sm:$0xff] %v1283_v45  ;;  %1299 = vst [vmem:[#allocation2 + $0x30] sm:$0xff] %v1287_v63 }
 0x4c3 PF: > { %p1777_p0 = scmp.ne.s32.totalorder %s2491_s13, 1 }
 0x4c4   : > { %v1778_v1 = vld [vmem:[%s2916_s5] ss:$0 sm:$0xff] (!%p1777_p0) }
 0x4c5   : > { %1303 = sbr.rel (%p1777_p0) target bundleno = 1235 (0x4d3), region = 104  ;;  %v1311_v2 = vadd.f32 (!%p1777_p0), %v1778_v1, %v2782_v10  ;;  %v1312_v3 = vadd.f32 (!%p1777_p0), %v1778_v1, %v2790_v14  ;;  %v1313_v4 = vadd.f32 (!%p1777_p0), %v2778_v8, %v1778_v1  ;;  %v1314_v5 = vadd.f32 (!%p1777_p0), %v2786_v12, %v1778_v1 }
 0x4c6   : > { %v1315_v6 = vadd.f32 (!%p1777_p0), %v1778_v1, %v2798_v18  ;;  %v1316_v7 = vadd.f32 (!%p1777_p0), %v1778_v1, %v2806_v22  ;;  %v1317_v24 = vadd.f32 (!%p1777_p0), %v2794_v16, %v1778_v1  ;;  %v1318_v25 = vadd.f32 (!%p1777_p0), %v2802_v20, %v1778_v1 }
 0x4c7   : > { %v1327_v26 = vmax.f32 (!%p1777_p0), %v1311_v2, 0.0  ;;  %v1328_v27 = vmax.f32 (!%p1777_p0), %v1312_v3, 0.0  ;;  %v1329_v28 = vmax.f32 (!%p1777_p0), %v1313_v4, 0.0  ;;  %v1330_v29 = vmax.f32 (!%p1777_p0), %v1314_v5, 0.0 }
 0x4c8   : > { %v1331_v30 = vmax.f32 (!%p1777_p0), %v1315_v6, 0.0  ;;  %v1332_v31 = vmax.f32 (!%p1777_p0), %v1316_v7, 0.0  ;;  %v1333_v32 = vmax.f32 (!%p1777_p0), %v1317_v24, 0.0  ;;  %v1334_v33 = vmax.f32 (!%p1777_p0), %v1318_v25, 0.0 }
 0x4c9   : > { %v1343_v34 = vpack.c.bf16 (!%p1777_p0), %v1328_v27, %v1327_v26  ;;  %v1344_v35 = vpack.c.bf16 (!%p1777_p0), %v1330_v29, %v1329_v28  ;;  %v1319_v36 = vadd.f32 (!%p1777_p0), %v1778_v1, %v2784_v11  ;;  %v1320_v37 = vadd.f32 (!%p1777_p0), %v1778_v1, %v2792_v15 }
 0x4ca   : > { %v1345_v38 = vpack.c.bf16 (!%p1777_p0), %v1332_v31, %v1331_v30  ;;  %v1346_v39 = vpack.c.bf16 (!%p1777_p0), %v1334_v33, %v1333_v32  ;;  %v1321_v40 = vadd.f32 (!%p1777_p0), %v2780_v9, %v1778_v1  ;;  %v1322_v41 = vadd.f32 (!%p1777_p0), %v2788_v13, %v1778_v1 }
 0x4cb   : > { %1355 = vst [vmem:[#allocation3] sm:$0xff] (!%p1777_p0), %v1343_v34  ;;  %1356 = vst [vmem:[#allocation3 + $0x8] sm:$0xff] (!%p1777_p0), %v1344_v35  ;;  %v1335_v42 = vmax.f32 (!%p1777_p0), %v1319_v36, 0.0  ;;  %v1336_v43 = vmax.f32 (!%p1777_p0), %v1320_v37, 0.0  ;;  %v1323_v44 = vadd.f32 (!%p1777_p0), %v1778_v1, %v2800_v19  ;;  %v1324_v45 = vadd.f32 (!%p1777_p0), %v1778_v1, %v2808_v23 }
 0x4cc   : > { %1357 = vst [vmem:[#allocation3 + $0x10] sm:$0xff] %v1345_v38  ;;  %1358 = vst [vmem:[#allocation3 + $0x18] sm:$0xff] %v1346_v39  ;;  %v1337_v46 = vmax.f32 %v1321_v40, 0.0  ;;  %v1338_v47 = vmax.f32 %v1322_v41, 0.0  ;;  %v1325_v48 = vadd.f32 %v2796_v17, %v1778_v1  ;;  %v1326_v49 = vadd.f32 %v2804_v21, %v1778_v1 }
 0x4cd   : > { %v1347_v50 = vpack.c.bf16 %v1336_v43, %v1335_v42  ;;  %v1339_v51 = vmax.f32 %v1323_v44, 0.0  ;;  %v1340_v52 = vmax.f32 %v1324_v45, 0.0 }
 0x4ce   : > { %v1348_v53 = vpack.c.bf16 %v1338_v47, %v1337_v46  ;;  %v1341_v54 = vmax.f32 %v1325_v48, 0.0  ;;  %v1342_v55 = vmax.f32 %v1326_v49, 0.0 }
 0x4cf   : > { %1359 = vst [vmem:[#allocation3 + $0x20] sm:$0xff] %v1347_v50  ;;  %v1349_v56 = vpack.c.bf16 %v1340_v52, %v1339_v51 }
 0x4d0   : > { %1360 = vst [vmem:[#allocation3 + $0x28] sm:$0xff] %v1348_v53  ;;  %v1350_v57 = vpack.c.bf16 %v1342_v55, %v1341_v54 }
 0x4d1   : > { %1361 = vst [vmem:[#allocation3 + $0x30] sm:$0xff] %v1349_v56 }
 0x4d2   : > { %1362 = vst [vmem:[#allocation3 + $0x38] sm:$0xff] %v1350_v57 }
 0x4d3 PF: > { %p1779_p1 = scmp.ne.s32.totalorder %s2491_s13, 2 }
 0x4d4   : > { %v2255_v58 = vld [vmem:[#allocation14] sm:$0xff] (!%p1779_p1)   ;;  %v2256_v59 = vld [vmem:[#allocation14 + $0x8] sm:$0xff] (!%p1779_p1)   ;;  %v2257_v60 = vld [vmem:[#allocation14 + $0x10] sm:$0xff] (!%p1779_p1)  }
 0x4d5   : > { %1365 = sbr.rel (%p1779_p1) target bundleno = 1495 (0x5d7), region = 108  ;;  %2006 = vmatprep.subr.bf16.mxu0 (!%p1779_p1), %v2255_v58  ;;  %2102 = vmatprep.subr.bf16.mxu1 (!%p1779_p1), %v2255_v58  ;;  %v2258_v61 = vld [vmem:[#allocation14 + $0x18] sm:$0xff] (!%p1779_p1)   ;;  %v1780_v62 = vld [vmem:[%s2918_s7] ss:$0 sm:$0xff] (!%p1779_p1) }
 0x4d6   : > { %2007 = vmatpush3.bf16.msra.mxu0 (!%p1779_p1), %v2255_v58  ;;  %2110 = vmatpush3.bf16.msra.mxu1 (!%p1779_p1), %v2255_v58  ;;  %v1373_v63 = vadd.f32 (!%p1779_p1), %v1780_v62, %v2782_v10  ;;  %v1374_v0 = vadd.f32 (!%p1779_p1), %v1780_v62, %v2790_v14  ;;  %v1381_v1 = vadd.f32 (!%p1779_p1), %v1780_v62, %v2784_v11  ;;  %v2259_v5 = vld [vmem:[#allocation14 + $0x20] sm:$0xff] (!%p1779_p1)   ;;  %v2260_v10 = vld [vmem:[#allocation14 + $0x28] sm:$0xff] (!%p1779_p1)   ;;  %v2261_v11 = vld [vmem:[#allocation14 + $0x30] sm:$0xff] (!%p1779_p1)  }
 0x4d7   : > { %2008 = vmatprep.subr.bf16.mxu0 (!%p1779_p1), %v2256_v59  ;;  %2103 = vmatprep.subr.bf16.mxu1 (!%p1779_p1), %v2256_v59  ;;  %v1382_v2 = vadd.f32 (!%p1779_p1), %v1780_v62, %v2792_v15  ;;  %v2262_v14 = vld [vmem:[#allocation14 + $0x38] sm:$0xff] (!%p1779_p1)   ;;  %v1375_v15 = vadd.f32 (!%p1779_p1), %v2778_v8, %v1780_v62  ;;  %v1376_v6 = vadd.f32 (!%p1779_p1), %v2786_v12, %v1780_v62  ;;  %v1781_v31 = vld [vmem:[%s2920_s9] ss:$0 sm:$0xff] (!%p1779_p1) }
 0x4d8   : > { %v1389_v3 = vpack.c.bf16 (!%p1779_p1), %v1374_v0, %v1373_v63  ;;  %v1383_v7 = vadd.f32 (!%p1779_p1), %v2780_v9, %v1780_v62  ;;  %v1384_v24 = vadd.f32 (!%p1779_p1), %v2788_v13, %v1780_v62  ;;  %v1377_v25 = vadd.f32 (!%p1779_p1), %v1780_v62, %v2798_v18 }
 0x4d9   : > { %v1393_v4 = vpack.c.bf16 (!%p1779_p1), %v1382_v2, %v1381_v1  ;;  %v1378_v26 = vadd.f32 (!%p1779_p1), %v1780_v62, %v2806_v22  ;;  %v1385_v27 = vadd.f32 (!%p1779_p1), %v1780_v62, %v2800_v19  ;;  %v1386_v28 = vadd.f32 (!%p1779_p1), %v1780_v62, %v2808_v23 }
 0x4da   : > { %2009 = vmatpush3.bf16.msra.mxu0 (!%p1779_p1), %v2256_v59  ;;  %2111 = vmatpush3.bf16.msra.mxu1 (!%p1779_p1), %v2256_v59  ;;  %v1390_v29 = vpack.c.bf16 (!%p1779_p1), %v1376_v6, %v1375_v15  ;;  %v1394_v8 = vpack.c.bf16 (!%p1779_p1), %v1384_v24, %v1383_v7  ;;  %v1379_v13 = vadd.f32 (!%p1779_p1), %v2794_v16, %v1780_v62 }
 0x4db   : > { %2010 = vmatprep.subr.bf16.mxu0 (!%p1779_p1), %v2257_v60  ;;  %2104 = vmatprep.subr.bf16.mxu1 (!%p1779_p1), %v2257_v60  ;;  %v1391_v12 = vpack.c.bf16 (!%p1779_p1), %v1378_v26, %v1377_v25  ;;  %v1395_v9 = vpack.c.bf16 (!%p1779_p1), %v1386_v28, %v1385_v27  ;;  %v1380_v18 = vadd.f32 (!%p1779_p1), %v2802_v20, %v1780_v62 }
 0x4dc   : > { %2022 = vmatprep.mubr.bf16.mxu0 %v1389_v3  ;;  %2030 = vmatprep.mubr.bf16.mxu1 %v1393_v4  ;;  %v1387_v22 = vadd.f32 %v2796_v17, %v1780_v62  ;;  %v1388_v19 = vadd.f32 %v2804_v21, %v1780_v62 }
 0x4dd   : > { %v1392_v23 = vpack.c.bf16 %v1380_v18, %v1379_v13 }
 0x4de   : > { %2011 = vmatpush3.bf16.msra.mxu0 %v2257_v60  ;;  %2112 = vmatpush3.bf16.msra.mxu1 %v2257_v60  ;;  %v1396_v30 = vpack.c.bf16 %v1388_v19, %v1387_v22 }
 0x4df   : > { %2012 = vmatprep.subr.bf16.mxu0 %v2258_v61  ;;  %2105 = vmatprep.subr.bf16.mxu1 %v2258_v61 }
 0x4e2   : > { %2013 = vmatpush3.bf16.msra.mxu0 %v2258_v61  ;;  %2113 = vmatpush3.bf16.msra.mxu1 %v2258_v61 }
 0x4e3   : > { %2014 = vmatprep.subr.bf16.mxu0 %v2259_v5  ;;  %2106 = vmatprep.subr.bf16.mxu1 %v2259_v5 }
 0x4e6   : > { %2015 = vmatpush3.bf16.msra.mxu0 %v2259_v5  ;;  %2114 = vmatpush3.bf16.msra.mxu1 %v2259_v5 }
 0x4e7   : > { %2016 = vmatprep.subr.bf16.mxu0 %v2260_v10  ;;  %2107 = vmatprep.subr.bf16.mxu1 %v2260_v10 }
 0x4ea   : > { %2017 = vmatpush3.bf16.msra.mxu0 %v2260_v10  ;;  %2115 = vmatpush3.bf16.msra.mxu1 %v2260_v10 }
 0x4eb   : > { %2018 = vmatprep.subr.bf16.mxu0 %v2261_v11  ;;  %2108 = vmatprep.subr.bf16.mxu1 %v2261_v11 }
 0x4ee   : > { %2019 = vmatpush3.bf16.msra.mxu0 %v2261_v11  ;;  %2116 = vmatpush3.bf16.msra.mxu1 %v2261_v11 }
 0x4ef   : > { %2020 = vmatprep.subr.bf16.mxu0 %v2262_v14  ;;  %2109 = vmatprep.subr.bf16.mxu1 %v2262_v14 }
 0x4f2   : > { %2021 = vmatpush3.bf16.msra.mxu0 %v2262_v14  ;;  %2117 = vmatpush3.bf16.msra.mxu1 %v2262_v14 }
 0x4f5   : > { %2023 = vmatmul.mubr.bf16.vlgmr.msra.gmra.mrb[0].mxu0 %v1390_v29  ;;  %2031 = vmatmul.mubr.bf16.vlgmr.msra.gmra.mrb[0].mxu1 %v1394_v8 }
 0x4f6   : > { %2026 = vmatprep.mubr.bf16.mxu0 %v1391_v12  ;;  %2034 = vmatprep.mubr.bf16.mxu1 %v1395_v9 }
 0x4fd   : > { %2027 = vmatmul.mubr.bf16.gmra.mrb[4].mxu0 %v1392_v23  ;;  %2035 = vmatmul.mubr.bf16.gmra.mrb[4].mxu1 %v1396_v30 }
 0x5c8   : > { %v2024_v32 = vpop.f32.mrb[0].mxu0  ;;  %v2032_v16 = vpop.f32.mrb[0].mxu1 }
 0x5c9   : > { %v1511_v33 = vadd.f32 %v2024_v32, %v1781_v31  ;;  %v1543_v34 = vadd.f32 %v2032_v16, %v1781_v31  ;;  %v1502_v35 = vpop.f32.mrb[1].mxu0  ;;  %v1534_v20 = vpop.f32.mrb[1].mxu1 }
 0x5ca   : > { %v1503_v36 = vadd.f32 %v1781_v31, %v1502_v35  ;;  %v1535_v17 = vadd.f32 %v1781_v31, %v1534_v20  ;;  %v2025_v37 = vpop.f32.mrb[2].mxu0  ;;  %v2033_v21 = vpop.f32.mrb[2].mxu1 }
 0x5cb   : > { %1567 = vst [vmem:[#allocation16 + $0x10] sm:$0xff] %v1511_v33  ;;  %1575 = vst [vmem:[#allocation16 + $0x50] sm:$0xff] %v1543_v34  ;;  %v1514_v38 = vadd.f32 %v2025_v37, %v1781_v31  ;;  %v1546_v39 = vadd.f32 %v2033_v21, %v1781_v31  ;;  %v1505_v40 = vpop.f32.mrb[3].mxu0  ;;  %v1537_v41 = vpop.f32.mrb[3].mxu1 }
 0x5cc   : > { %1565 = vst [vmem:[#allocation16] sm:$0xff] %v1503_v36  ;;  %1573 = vst [vmem:[#allocation16 + $0x40] sm:$0xff] %v1535_v17  ;;  %v1506_v42 = vadd.f32 %v1781_v31, %v1505_v40  ;;  %v1538_v43 = vadd.f32 %v1781_v31, %v1537_v41 }
 0x5cd   : > { %1568 = vst [vmem:[#allocation16 + $0x18] sm:$0xff] %v1514_v38  ;;  %1576 = vst [vmem:[#allocation16 + $0x58] sm:$0xff] %v1546_v39 }
 0x5ce   : > { %1566 = vst [vmem:[#allocation16 + $0x8] sm:$0xff] %v1506_v42  ;;  %1574 = vst [vmem:[#allocation16 + $0x48] sm:$0xff] %v1538_v43 }
 0x5d0   : > { %v2028_v44 = vpop.f32.mrb[4].mxu0  ;;  %v2036_v45 = vpop.f32.mrb[4].mxu1 }
 0x5d1   : > { %v1527_v46 = vadd.f32 %v2028_v44, %v1781_v31  ;;  %v1559_v47 = vadd.f32 %v2036_v45, %v1781_v31  ;;  %v1518_v48 = vpop.f32.mrb[5].mxu0  ;;  %v1550_v49 = vpop.f32.mrb[5].mxu1 }
 0x5d2   : > { %v1519_v50 = vadd.f32 %v1781_v31, %v1518_v48  ;;  %v1551_v51 = vadd.f32 %v1781_v31, %v1550_v49  ;;  %v2029_v52 = vpop.f32.mrb[6].mxu0  ;;  %v2037_v53 = vpop.f32.mrb[6].mxu1 }
 0x5d3   : > { %1571 = vst [vmem:[#allocation16 + $0x30] sm:$0xff] %v1527_v46  ;;  %1579 = vst [vmem:[#allocation16 + $0x70] sm:$0xff] %v1559_v47  ;;  %v1530_v54 = vadd.f32 %v2029_v52, %v1781_v31  ;;  %v1562_v55 = vadd.f32 %v2037_v53, %v1781_v31  ;;  %v1521_v56 = vpop.f32.mrb[7].mxu0  ;;  %v1553_v57 = vpop.f32.mrb[7].mxu1 }
 0x5d4   : > { %1569 = vst [vmem:[#allocation16 + $0x20] sm:$0xff] %v1519_v50  ;;  %1577 = vst [vmem:[#allocation16 + $0x60] sm:$0xff] %v1551_v51  ;;  %v1522_v58 = vadd.f32 %v1781_v31, %v1521_v56  ;;  %v1554_v59 = vadd.f32 %v1781_v31, %v1553_v57 }
 0x5d5   : > { %1572 = vst [vmem:[#allocation16 + $0x38] sm:$0xff] %v1530_v54  ;;  %1580 = vst [vmem:[#allocation16 + $0x78] sm:$0xff] %v1562_v55 }
 0x5d6   : > { %1570 = vst [vmem:[#allocation16 + $0x28] sm:$0xff] %v1522_v58  ;;  %1578 = vst [vmem:[#allocation16 + $0x68] sm:$0xff] %v1554_v59 }
 0x5d7 PF: > { %p1790_p4 = scmp.ge.s32.totalorder %s2491_s13, 2 }
 0x5d8   : > { %v2509_v60 = vmov (!%p1790_p4), 0.0  }
 0x5d9   : > { %1584 = sbr.rel (%p1790_p4) target bundleno = 1505 (0x5e1), region = 112  ;;  %1585 = vst [vmem:[#allocation16] sm:$0xff] (!%p1790_p4), %v2509_v60  ;;  %1586 = vst [vmem:[#allocation16 + $0x8] sm:$0xff] (!%p1790_p4), %v2509_v60 }
 0x5da   : > { %1587 = vst [vmem:[#allocation16 + $0x10] sm:$0xff] (!%p1790_p4), %v2509_v60  ;;  %1588 = vst [vmem:[#allocation16 + $0x18] sm:$0xff] (!%p1790_p4), %v2509_v60 }
 0x5db   : > { %1589 = vst [vmem:[#allocation16 + $0x20] sm:$0xff] (!%p1790_p4), %v2509_v60  ;;  %1590 = vst [vmem:[#allocation16 + $0x28] sm:$0xff] (!%p1790_p4), %v2509_v60 }
 0x5dc   : > { %1591 = vst [vmem:[#allocation16 + $0x30] sm:$0xff] (!%p1790_p4), %v2509_v60  ;;  %1592 = vst [vmem:[#allocation16 + $0x38] sm:$0xff] (!%p1790_p4), %v2509_v60 }
 0x5dd   : > { %1593 = vst [vmem:[#allocation16 + $0x40] sm:$0xff] (!%p1790_p4), %v2509_v60  ;;  %1594 = vst [vmem:[#allocation16 + $0x48] sm:$0xff] (!%p1790_p4), %v2509_v60 }
 0x5de   : > { %1595 = vst [vmem:[#allocation16 + $0x50] sm:$0xff] (!%p1790_p4), %v2509_v60  ;;  %1596 = vst [vmem:[#allocation16 + $0x58] sm:$0xff] (!%p1790_p4), %v2509_v60 }
 0x5df   : > { %1597 = vst [vmem:[#allocation16 + $0x60] sm:$0xff] (!%p1790_p4), %v2509_v60  ;;  %1598 = vst [vmem:[#allocation16 + $0x68] sm:$0xff] (!%p1790_p4), %v2509_v60 }
 0x5e0   : > { %1599 = vst [vmem:[#allocation16 + $0x70] sm:$0xff] %v2509_v60  ;;  %1600 = vst [vmem:[#allocation16 + $0x78] sm:$0xff] %v2509_v60 }
 0x5e1 PF: > { %s2940_s13 = sadd.s32 4294967295, %s2499_s15   ;;  %s2510_s1 = smov [#allocation16]  }
 0x5e2   : > { %p2876_p6 = scmp.eq.s32.totalorder %s2940_s13, 2  ;;  %s1610_s11 = sshll.u32 %s2510_s1, 4  ;;  %s1611_s11 = int_to_ptr.vmem [resolvable:$true] %s1610_s11 }
 0x5e3   : > { %s2431_s20 = scalar_lea.vmem %s1611_s11, 2048  ;;  %p2438_p11 = scmp.lt.s32.totalorder %s1611_s11, %s1611_s11 }
 0x5e4   : > { %p2432_p8 = scmp.ne.s32.totalorder %s1611_s11, %s2431_s20  ;;  %p2439_p2 = scmp.lt.s32.totalorder %s2431_s20, %s2431_s20 }
 0x5e6   : > { %p2433_p9 = pnand %p2432_p8, %p2876_p6  ;;  %p2440_p7 = por %p2439_p2, %p2438_p11 }
 0x5e8   : > { %p2434_p10 = pneg %p2433_p9 }
 0x5ea   : > { %p2441_p5 = pnand %p2440_p7, %p2434_p10 }
 0x5ec   : > { %2444 = shalt.err (!%p2441_p5)
}
 0x5ed   : > { %s2942_s24 = sld [smem:[#allocation24_spill]] }
 0x5f3   : > { %s2445_s26 = scalar_lea.hbm %s2942_s24, 2048 }
 0x5f4   : > { %p2446_p3 = scmp.ne.s32.totalorder %s2942_s24, %s2445_s26  ;;  %p2451_p0 = scmp.lt.u32.totalorder %s2445_s26, %s2942_s24 }
 0x5f6   : > { %p2447_p12 = pnand %p2446_p3, %p2876_p6 }
 0x5f8   : > { %p2448_p13 = pneg %p2447_p12 }
 0x5fa   : > { %p2453_p1 = pnand %p2451_p0, %p2448_p13 }
 0x5fc   : > { %2456 = shalt.err (!%p2453_p1)
}
 0x5fd   : > { %s2511_s18 = smov 128   ;;  %s2512_s23 = smov 8  }
 0x5fe   : > { %2143 = dma.vmem_to_hbm [thread:$0]  (%p2876_p6), %s1611_s11, 2048, %s2942_s24, [#allocation7], %s2511_s18, %s2511_s18, %s2512_s23  }
 0x5ff   : > { %2486 = dma.done.wait (%p2876_p6), [#allocation7], 2048  }
 0x600   : > { %2488 = vsyncadd (%p2876_p6), [#allocation7], 4294965248 }
 0x601 PF: > { %s25_s15 = sadd.s32 1, %s2499_s15   ;;  %s2943_s13 = smov %s2495_s14 }
 0x602   : > { %p22_p4 = scmp.ge.s32.totalorder %s25_s15, 5   ;;  %s2944_s14 = smov %s2946_s29 }
 0x604   :  { %24 = sbr.rel (!%p22_p4) target bundleno = 10 (0xa), region = 141 }
 0x60b   :  { %1626 = vsyncpa [#allocation6], 1 }
 0x60c   :  { %1628 = vsyncpa [#allocation6 + $0x1], 1 }
 0x60d   :  { %1629 = vsyncpa [#allocation9], 1 }
 0x60e   :  { %1630 = vsyncpa [#allocation12], 1 }
 0x60f   :  { %1631 = vsyncpa [#allocation15], 1 }
 0x610   :  { %1632 = vsyncpa [#allocation7], 1 }
 0x611   :  { %1634 = vsyncpa [#allocation7 + $0x1], 1 }

</bundles_post_ra>
